<compile_context>
chip_gen: v6e
topology: v6e:2x2x1
jax: 0.10.0
libtpu: 0.0.40
codegen_flags: <defaults>
</compile_context>

<pallas_src>
import jax
import jax.numpy as jnp
from jax.experimental import pallas as pl
from jax.experimental.pallas import tpu as pltpu

LANE = 128


def _round_up(x, m):
    return (x + m - 1) // m * m


def _choose_batch_tile(B):
    """Batch-tile heuristic:
       * large tiles amortize the ~0.35us per-grid-step overhead,
       * cap at ceil(B/2) (rounded to 8) so the grid has >=2 steps and the
         "parallel" batch axis actually splits across v7x's two TensorCores,
       * among candidates, minimize last-tile padding waste.
    """
    if B <= 16:
        return max(8, _round_up(B, 8))
    cap = min(512, _round_up((B + 1) // 2, 8))
    best_tb = cap
    best_waste = _round_up(B, cap) - B
    for cand in (512, 256, 128, 64, 32, 16):
        if cand > cap:
            continue
        waste = _round_up(B, cand) - B
        if waste < best_waste:
            best_tb, best_waste = cand, waste
    return best_tb


def policy_net_kernel(x_ref, w1_ref, b1_ref, w2_ref, b2_ref, w3_ref, b3_ref,
                      out_ref):
    """Fused MLP forward for one batch tile: 3 matmuls + ReLUs + softmax."""
    # bf16 MXU inputs, f32 accumulation.
    x = x_ref[...].astype(jnp.bfloat16)

    # Linear(state_dim, 512) + ReLU; keep the intermediate in bf16 so the
    # (tb, 512) tensor only costs half the VMEM spill traffic.
    h1 = jnp.dot(x, w1_ref[...], preferred_element_type=jnp.float32)
    h1 = jnp.maximum(h1 + b1_ref[...], 0.0).astype(jnp.bfloat16)

    # Linear(512, 1024) + ReLU, same bf16-intermediate trick.
    h2 = jnp.dot(h1, w2_ref[...], preferred_element_type=jnp.float32)
    h2 = jnp.maximum(h2 + b2_ref[...], 0.0).astype(jnp.bfloat16)

    # Linear(1024, action_dim_padded); logits stay f32 (padded cols get -1e30
    # via the bias — only valid in f32, do NOT move b3/logits to bf16).
    logits = jnp.dot(h2, w3_ref[...], preferred_element_type=jnp.float32)
    logits = logits + b3_ref[...]

    # Numerically stable softmax over the lane-dense last dim.
    m = jnp.max(logits, axis=-1, keepdims=True)
    e = jnp.exp(logits - m)
    denom = jnp.sum(e, axis=-1, keepdims=True)
    # approx=False -> exact normalization (rows sum to 1 within f32 rounding).
    out_ref[...] = e * pl.reciprocal(denom, approx=False)


def policy_net_forward(state, params):
    """Runs the fused Pallas kernel.

    state  : (B, state_dim) float32
    params : dict with w1 (state_dim,512), b1 (1,512), w2 (512,1024),
             b2 (1,1024), w3 (1024,action_dim), b3 (1,action_dim)
    returns: (B, action_dim) float32 softmax probabilities
    """
    B, state_dim = state.shape
    action_dim = params["w3"].shape[1]

    # --- dtype & padding plumbing (wrapper-side, layout only) ---------------
    w1 = params["w1"].astype(jnp.bfloat16)
    w2 = params["w2"].astype(jnp.bfloat16)
    w3 = params["w3"].astype(jnp.bfloat16)
    b1 = params["b1"].astype(jnp.float32)
    b2 = params["b2"].astype(jnp.float32)
    b3 = params["b3"].astype(jnp.float32)

    # Lane-dense state dim (zero pad x columns and w1 rows: dot unchanged).
    s_pad = _round_up(state_dim, LANE)
    if s_pad != state_dim:
        w1 = jnp.pad(w1, ((0, s_pad - state_dim), (0, 0)))

    # Lane-dense action dim (padded logits biased to -1e30 -> ~0 after softmax).
    a_pad = _round_up(action_dim, LANE)
    if a_pad != action_dim:
        w3 = jnp.pad(w3, ((0, 0), (0, a_pad - action_dim)))
        b3 = jnp.pad(b3, ((0, 0), (0, a_pad - action_dim)),
                     constant_values=-1e30)  # f32-only trick (see header note)

    tb = _choose_batch_tile(B)
    b_pad = _round_up(B, tb)
    x = jnp.pad(state, ((0, b_pad - B), (0, s_pad - state_dim)))

    h1_dim = w1.shape[1]
    h2_dim = w2.shape[1]

    def resident(shape):
        # Constant block index -> block stays VMEM-resident across grid steps;
        # single-buffered since it never changes (saves one weight-sized copy).
        return pl.BlockSpec(shape, lambda i: (0, 0),
                            pipeline_mode=pl.Buffered(1))

    out = pl.pallas_call(
        policy_net_kernel,
        out_shape=jax.ShapeDtypeStruct((b_pad, a_pad), jnp.float32),
        grid_spec=pltpu.PrefetchScalarGridSpec(
            num_scalar_prefetch=0,
            grid=(b_pad // tb,),
            in_specs=[
                pl.BlockSpec((tb, s_pad), lambda i: (i, 0)),  # x tile
                resident((s_pad, h1_dim)),                    # w1 (padded K)
                resident((1, h1_dim)),                        # b1
                resident((h1_dim, h2_dim)),                   # w2
                resident((1, h2_dim)),                        # b2
                resident((h2_dim, a_pad)),                    # w3 (padded N)
                resident((1, a_pad)),                         # b3 (padded N)
            ],
            out_specs=pl.BlockSpec((tb, a_pad), lambda i: (i, 0)),
        ),
        compiler_params=pltpu.CompilerParams(
            dimension_semantics=("parallel",)),   # v7x: shard batch over 2 TCs
    )(x, w1, b1, w2, b2, w3, b3)

    return out[:B, :action_dim]


def init_params(key, state_dim, action_dim):
    """Deterministic init mimicking nn.Linear's U(-1/sqrt(fan_in), 1/sqrt(fan_in)).

    Weights are stored in bfloat16 (the kernel's MXU input dtype); biases in f32.
    """
    dims = [(state_dim, 512), (512, 1024), (1024, action_dim)]
    params = {}
    for i, (fan_in, fan_out) in enumerate(dims, start=1):
        key, kw, kb = jax.random.split(key, 3)
        bound = 1.0 / jnp.sqrt(jnp.float32(fan_in))
        w = jax.random.uniform(kw, (fan_in, fan_out), jnp.float32,
                               minval=-bound, maxval=bound)
        b = jax.random.uniform(kb, (1, fan_out), jnp.float32,
                               minval=-bound, maxval=bound)
        params[f"w{i}"] = w.astype(jnp.bfloat16)
        params[f"b{i}"] = b
    return params


def _reference_forward(state, params):
    """Pure-JAX reference with the same bf16-matmul / f32-math recipe."""
    x = state.astype(jnp.bfloat16)
    h1 = jnp.maximum(
        jnp.dot(x, params["w1"].astype(jnp.bfloat16),
                preferred_element_type=jnp.float32) + params["b1"], 0.0)
    h2 = jnp.maximum(
        jnp.dot(h1.astype(jnp.bfloat16), params["w2"].astype(jnp.bfloat16),
                preferred_element_type=jnp.float32) + params["b2"], 0.0)
    logits = jnp.dot(h2.astype(jnp.bfloat16), params["w3"].astype(jnp.bfloat16),
                     preferred_element_type=jnp.float32) + params["b3"]
    return jax.nn.softmax(logits, axis=-1)


if __name__ == "__main__":
    key = jax.random.PRNGKey(0)
    k_state, k_params = jax.random.split(key)

    B = 8            # batch of states
    state_dim = 32   # small state dimension
    action_dim = 16  # small action dimension

    state = jax.random.normal(k_state, (B, state_dim), dtype=jnp.float32)
    params = init_params(k_params, state_dim, action_dim)

    probs = policy_net_forward(state, params)
    probs = jax.block_until_ready(probs)

    # Sanity: shape, rows sum to ~1, probabilities non-negative, matches the
    # pure-JAX reference that uses the same bf16-matmul recipe.
    assert probs.shape == (B, action_dim)
    row_sums = jnp.sum(probs, axis=-1)
    assert bool(jnp.all(jnp.abs(row_sums - 1.0) < 1e-3))
    assert bool(jnp.all(probs >= 0.0))
    ref = _reference_forward(state, params)
    assert bool(jnp.all(jnp.abs(probs - ref) < 2e-3))

    print("KERNEL_OK")
</pallas_src>

<mosaic_0001>
module attributes {stable_mosaic.version = 11 : i64} {
  func.func @policy_net_kernel(%arg0: i32, %arg1: memref<8x128xf32, #tpu.memory_space<vmem>>, %arg2: memref<128x512xbf16, #tpu.memory_space<vmem>>, %arg3: memref<1x512xf32, #tpu.memory_space<vmem>>, %arg4: memref<512x1024xbf16, #tpu.memory_space<vmem>>, %arg5: memref<1x1024xf32, #tpu.memory_space<vmem>>, %arg6: memref<1024x128xbf16, #tpu.memory_space<vmem>>, %arg7: memref<1x128xf32, #tpu.memory_space<vmem>>, %arg8: memref<8x128xf32, #tpu.memory_space<vmem>>) attributes {dimension_semantics = [#tpu.dimension_semantics<parallel>], iteration_bounds = array<i64: 1>, scalar_prefetch = 0 : i64, scratch_operands = 0 : i64, tpu.core_type = #tpu.core_type<tc>, window_params = [{transform_indices = @transform_0, window_bounds = array<i64: 8, 128>}, {pipeline_mode = #tpu.pipeline_mode<synchronous>, transform_indices = @transform_1, window_bounds = array<i64: 128, 512>}, {pipeline_mode = #tpu.pipeline_mode<synchronous>, transform_indices = @transform_2, window_bounds = array<i64: 1, 512>}, {pipeline_mode = #tpu.pipeline_mode<synchronous>, transform_indices = @transform_3, window_bounds = array<i64: 512, 1024>}, {pipeline_mode = #tpu.pipeline_mode<synchronous>, transform_indices = @transform_4, window_bounds = array<i64: 1, 1024>}, {pipeline_mode = #tpu.pipeline_mode<synchronous>, transform_indices = @transform_5, window_bounds = array<i64: 1024, 128>}, {pipeline_mode = #tpu.pipeline_mode<synchronous>, transform_indices = @transform_6, window_bounds = array<i64: 1, 128>}, {transform_indices = @transform_7, window_bounds = array<i64: 8, 128>}]} {
    %c0 = arith.constant 0 : index
    %c0_0 = arith.constant 0 : index
    %0 = vector.load %arg1[%c0, %c0_0] : memref<8x128xf32, #tpu.memory_space<vmem>>, vector<8x128xf32>
    %1 = arith.truncf %0 : vector<8x128xf32> to vector<8x128xbf16>
    %c0_1 = arith.constant 0 : index
    %c0_2 = arith.constant 0 : index
    %2 = vector.load %arg2[%c0_1, %c0_2] : memref<128x512xbf16, #tpu.memory_space<vmem>>, vector<128x512xbf16>
    %cst = arith.constant dense<0.000000e+00> : vector<8x512xf32>
    %3 = tpu.matmul %1, %2, %cst {dimension_numbers = #tpu.dot_dimension_numbers<[1], [0], [0], [1], [0, 0, 1, 1], [], []>} : vector<8x128xbf16>, vector<128x512xbf16>, vector<8x512xf32> -> vector<8x512xf32>
    %c0_3 = arith.constant 0 : index
    %c0_4 = arith.constant 0 : index
    %4 = vector.load %arg3[%c0_3, %c0_4] : memref<1x512xf32, #tpu.memory_space<vmem>>, vector<1x512xf32>
    %5 = vector.broadcast %4 : vector<1x512xf32> to vector<8x512xf32>
    %6 = arith.addf %3, %5 : vector<8x512xf32>
    %cst_5 = arith.constant 0.000000e+00 : f32
    %7 = vector.broadcast %cst_5 : f32 to vector<8x512xf32>
    %8 = arith.maximumf %6, %7 : vector<8x512xf32>
    %9 = arith.truncf %8 : vector<8x512xf32> to vector<8x512xbf16>
    %c0_6 = arith.constant 0 : index
    %c0_7 = arith.constant 0 : index
    %10 = vector.load %arg4[%c0_6, %c0_7] : memref<512x1024xbf16, #tpu.memory_space<vmem>>, vector<512x1024xbf16>
    %cst_8 = arith.constant dense<0.000000e+00> : vector<8x1024xf32>
    %11 = tpu.matmul %9, %10, %cst_8 {dimension_numbers = #tpu.dot_dimension_numbers<[1], [0], [0], [1], [0, 0, 1, 1], [], []>} : vector<8x512xbf16>, vector<512x1024xbf16>, vector<8x1024xf32> -> vector<8x1024xf32>
    %c0_9 = arith.constant 0 : index
    %c0_10 = arith.constant 0 : index
    %12 = vector.load %arg5[%c0_9, %c0_10] : memref<1x1024xf32, #tpu.memory_space<vmem>>, vector<1x1024xf32>
    %13 = vector.broadcast %12 : vector<1x1024xf32> to vector<8x1024xf32>
    %14 = arith.addf %11, %13 : vector<8x1024xf32>
    %cst_11 = arith.constant 0.000000e+00 : f32
    %15 = vector.broadcast %cst_11 : f32 to vector<8x1024xf32>
    %16 = arith.maximumf %14, %15 : vector<8x1024xf32>
    %17 = arith.truncf %16 : vector<8x1024xf32> to vector<8x1024xbf16>
    %c0_12 = arith.constant 0 : index
    %c0_13 = arith.constant 0 : index
    %18 = vector.load %arg6[%c0_12, %c0_13] : memref<1024x128xbf16, #tpu.memory_space<vmem>>, vector<1024x128xbf16>
    %cst_14 = arith.constant dense<0.000000e+00> : vector<8x128xf32>
    %19 = tpu.matmul %17, %18, %cst_14 {dimension_numbers = #tpu.dot_dimension_numbers<[1], [0], [0], [1], [0, 0, 1, 1], [], []>} : vector<8x1024xbf16>, vector<1024x128xbf16>, vector<8x128xf32> -> vector<8x128xf32>
    %c0_15 = arith.constant 0 : index
    %c0_16 = arith.constant 0 : index
    %20 = vector.load %arg7[%c0_15, %c0_16] : memref<1x128xf32, #tpu.memory_space<vmem>>, vector<1x128xf32>
    %21 = vector.broadcast %20 : vector<1x128xf32> to vector<8x128xf32>
    %22 = arith.addf %19, %21 : vector<8x128xf32>
    %cst_17 = arith.constant dense<0xFF800000> : vector<8xf32>
    %23 = vector.multi_reduction <maximumf>, %22, %cst_17 [1] : vector<8x128xf32> to vector<8xf32>
    %24 = vector.shape_cast %23 : vector<8xf32> to vector<8x1xf32>
    %25 = vector.broadcast %24 : vector<8x1xf32> to vector<8x128xf32>
    %26 = arith.subf %22, %25 : vector<8x128xf32>
    %27 = math.exp %26 : vector<8x128xf32>
    %cst_18 = arith.constant dense<0.000000e+00> : vector<8xf32>
    %28 = vector.multi_reduction <add>, %27, %cst_18 [1] : vector<8x128xf32> to vector<8xf32>
    %29 = vector.shape_cast %28 : vector<8xf32> to vector<8x1xf32>
    %30 = tpu.reciprocal %29 : vector<8x1xf32> -> vector<8x1xf32>
    %31 = vector.broadcast %30 : vector<8x1xf32> to vector<8x128xf32>
    %32 = arith.mulf %27, %31 : vector<8x128xf32>
    %c0_19 = arith.constant 0 : index
    %c0_20 = arith.constant 0 : index
    %33 = vector.load %arg8[%c0_19, %c0_20] : memref<8x128xf32, #tpu.memory_space<vmem>>, vector<8x128xf32>
    tpu.vector_store %arg8[%c0_19, %c0_20], %32 {strides = array<i32>} : memref<8x128xf32, #tpu.memory_space<vmem>>, vector<8x128xf32>,
    return
  }
  func.func @transform_0(%arg0: i32) -> (i32, i32) {
    %c0_i32 = arith.constant 0 : i32
    %c0_i32_0 = arith.constant 0 : i32
    return %arg0, %c0_i32 : i32, i32
  }
  func.func @transform_1(%arg0: i32) -> (i32, i32) {
    %c0_i32 = arith.constant 0 : i32
    %c0_i32_0 = arith.constant 0 : i32
    %c0_i32_1 = arith.constant 0 : i32
    return %c0_i32, %c0_i32_0 : i32, i32
  }
  func.func @transform_2(%arg0: i32) -> (i32, i32) {
    %c0_i32 = arith.constant 0 : i32
    %c0_i32_0 = arith.constant 0 : i32
    %c0_i32_1 = arith.constant 0 : i32
    return %c0_i32, %c0_i32_0 : i32, i32
  }
  func.func @transform_3(%arg0: i32) -> (i32, i32) {
    %c0_i32 = arith.constant 0 : i32
    %c0_i32_0 = arith.constant 0 : i32
    %c0_i32_1 = arith.constant 0 : i32
    return %c0_i32, %c0_i32_0 : i32, i32
  }
  func.func @transform_4(%arg0: i32) -> (i32, i32) {
    %c0_i32 = arith.constant 0 : i32
    %c0_i32_0 = arith.constant 0 : i32
    %c0_i32_1 = arith.constant 0 : i32
    return %c0_i32, %c0_i32_0 : i32, i32
  }
  func.func @transform_5(%arg0: i32) -> (i32, i32) {
    %c0_i32 = arith.constant 0 : i32
    %c0_i32_0 = arith.constant 0 : i32
    %c0_i32_1 = arith.constant 0 : i32
    return %c0_i32, %c0_i32_0 : i32, i32
  }
  func.func @transform_6(%arg0: i32) -> (i32, i32) {
    %c0_i32 = arith.constant 0 : i32
    %c0_i32_0 = arith.constant 0 : i32
    %c0_i32_1 = arith.constant 0 : i32
    return %c0_i32, %c0_i32_0 : i32, i32
  }
  func.func @transform_7(%arg0: i32) -> (i32, i32) {
    %c0_i32 = arith.constant 0 : i32
    %c0_i32_0 = arith.constant 0 : i32
    return %arg0, %c0_i32 : i32, i32
  }
}

</mosaic_0001>

<bundles_post_ra>
// kernel: tpu_custom_call.1
= control target key start
LH: loop header
LB: loop body
LE: loop exit
PB: predicated region body
PF: predicated region fallthrough
CT: control target
= control target key end

     0   :  { %12 = vsyncpa [#allocation3], 0  ;;  %s3898_s0 = inlined_call_operand.hbm [shape: f32[8,128], index: 0, kind: input, shape index: {}]   ;;  %s3899_s1 = inlined_call_operand.hbm [shape: bf16[128,512], index: 1, kind: input, shape index: {}]   ;;  %s3900_s2 = inlined_call_operand.hbm [shape: f32[1,512], index: 2, kind: input, shape index: {}]   ;;  %s3901_s3 = inlined_call_operand.hbm [shape: bf16[512,1024], index: 3, kind: input, shape index: {}]   ;;  %s3902_s4 = inlined_call_operand.hbm [shape: f32[1,1024], index: 4, kind: input, shape index: {}]   ;;  %s3903_s5 = inlined_call_operand.hbm [shape: bf16[1024,128], index: 5, kind: input, shape index: {}]   ;;  %s3904_s6 = inlined_call_operand.vmem [shape: f32[1,128], index: 6, kind: input, shape index: {}]   ;;  %s3905_s7 = inlined_call_operand.hbm [shape: f32[8,128], index: 7, kind: output, shape index: {}]  }
   0x1   :  { %13 = vsyncpa [#allocation6], 0 }
   0x2   :  { %14 = vsyncpa [#allocation9], 0 }
   0x3   :  { %15 = vsyncpa [#allocation12], 0 }
   0x4   :  { %16 = vsyncpa [#allocation4], 0  ;;  %s3760_s24 = smov [#allocation5]  }
   0x5   :  { %s32_s25 = sshll.u32 %s3760_s24, 4  ;;  %s33_s25 = int_to_ptr.vmem [resolvable:$true] %s32_s25 }
   0x6   :  { %s3618_s26 = scalar_lea.vmem %s33_s25, 4096  ;;  %p3623_p1 = scmp.lt.s32.totalorder %s33_s25, %s33_s25 }
   0x7   :  { %p3619_p0 = scmp.ne.s32.totalorder %s33_s25, %s3618_s26  ;;  %p3624_p2 = scmp.lt.s32.totalorder %s3618_s26, %s3618_s26 }
   0x9   :  { %p3625_p3 = por %p3624_p2, %p3623_p1 }
   0xb   :  { %p3626_p4 = pnand %p3625_p3, %p3619_p0 }
   0xd   :  { %3629 = shalt.err (!%p3626_p4)
}
   0xe   :  { %s3761_s27 = smov 256   ;;  %s3762_s28 = smov 16  }
   0xf   :  { %38 = dma.hbm_to_vmem [thread:$0]  %s3899_s1, 4096, %s33_s25, [#allocation6], %s3761_s27, %s3761_s27, %s3762_s28  }
  0x10   :  { %s3763_s8 = smov [#allocation8]  }
  0x11   :  { %s54_s9 = sshll.u32 %s3763_s8, 4  ;;  %s55_s9 = int_to_ptr.vmem [resolvable:$true] %s54_s9 }
  0x12   :  { %s3638_s10 = scalar_lea.vmem %s55_s9, 32768  ;;  %p3643_p6 = scmp.lt.s32.totalorder %s55_s9, %s55_s9 }
  0x13   :  { %p3639_p5 = scmp.ne.s32.totalorder %s55_s9, %s3638_s10  ;;  %p3644_p7 = scmp.lt.s32.totalorder %s3638_s10, %s3638_s10 }
  0x15   :  { %p3645_p8 = por %p3644_p7, %p3643_p6 }
  0x17   :  { %p3646_p9 = pnand %p3645_p8, %p3639_p5 }
  0x19   :  { %3649 = shalt.err (!%p3646_p9)
}
  0x1a   :  { %s3764_s11 = smov 512   ;;  %s3765_s12 = smov 32  }
  0x1b   :  { %60 = dma.hbm_to_vmem [thread:$0]  %s3901_s3, 32768, %s55_s9, [#allocation9], %s3764_s11, %s3764_s11, %s3765_s12  }
  0x1c   :  { %s3766_s15 = smov [#allocation2]   ;;  %s3767_s17 = smov [#allocation7]  }
  0x1d   :  { %s23_s16 = sshll.u32 %s3766_s15, 4  ;;  %s45_s1 = sshll.u32 %s3767_s17, 4  ;;  %s24_s16 = int_to_ptr.vmem [resolvable:$true] %s23_s16  ;;  %s46_s1 = int_to_ptr.vmem [resolvable:$true] %s45_s1 }
  0x1e   :  { %s3658_s18 = scalar_lea.vmem %s24_s16, 128  ;;  %p3663_p11 = scmp.lt.s32.totalorder %s24_s16, %s24_s16 }
  0x1f   :  { %p3659_p10 = scmp.ne.s32.totalorder %s24_s16, %s3658_s18  ;;  %p3664_p12 = scmp.lt.s32.totalorder %s3658_s18, %s3658_s18 }
  0x21   :  { %p3665_p13 = por %p3664_p12, %p3663_p11 }
  0x23   :  { %p3666_p0 = pnand %p3665_p13, %p3659_p10 }
  0x25   :  { %3669 = shalt.err (!%p3666_p0)
}
  0x26   :  { %26 = dma.hbm_to_vmem [thread:$0]  %s3898_s0, 128, %s24_s16, [#allocation3]  }
  0x27   :  { %s3678_s21 = scalar_lea.vmem %s46_s1, 64  ;;  %p3683_p2 = scmp.lt.s32.totalorder %s46_s1, %s46_s1 }
  0x28   :  { %p3679_p1 = scmp.ne.s32.totalorder %s46_s1, %s3678_s21  ;;  %p3684_p3 = scmp.lt.s32.totalorder %s3678_s21, %s3678_s21 }
  0x2a   :  { %p3685_p4 = por %p3684_p3, %p3683_p2 }
  0x2c   :  { %p3686_p5 = pnand %p3685_p4, %p3679_p1 }
  0x2e   :  { %3689 = shalt.err (!%p3686_p5)
}
  0x2f   :  { %48 = dma.hbm_to_vmem [thread:$0]  %s3900_s2, 64, %s46_s1, [#allocation6]  }
  0x30   :  { %s3768_s23 = smov [#allocation10]   ;;  %s3769_s25 = smov [#allocation11]  }
  0x31   :  { %s67_s24 = sshll.u32 %s3768_s23, 4  ;;  %s76_s26 = sshll.u32 %s3769_s25, 4  ;;  %s68_s24 = int_to_ptr.vmem [resolvable:$true] %s67_s24  ;;  %s77_s26 = int_to_ptr.vmem [resolvable:$true] %s76_s26 }
  0x32   :  { %s3698_s27 = scalar_lea.vmem %s68_s24, 128  ;;  %p3703_p7 = scmp.lt.s32.totalorder %s68_s24, %s68_s24 }
  0x33   :  { %p3699_p6 = scmp.ne.s32.totalorder %s68_s24, %s3698_s27  ;;  %p3704_p8 = scmp.lt.s32.totalorder %s3698_s27, %s3698_s27 }
  0x35   :  { %p3705_p9 = por %p3704_p8, %p3703_p7 }
  0x37   :  { %p3706_p10 = pnand %p3705_p9, %p3699_p6 }
  0x39   :  { %3709 = shalt.err (!%p3706_p10)
}
  0x3a   :  { %70 = dma.hbm_to_vmem [thread:$0]  %s3902_s4, 128, %s68_s24, [#allocation9]  }
  0x3b   :  { %s3718_s29 = scalar_lea.vmem %s77_s26, 8192  ;;  %p3723_p12 = scmp.lt.s32.totalorder %s77_s26, %s77_s26 }
  0x3c   :  { %p3719_p11 = scmp.ne.s32.totalorder %s77_s26, %s3718_s29  ;;  %p3724_p13 = scmp.lt.s32.totalorder %s3718_s29, %s3718_s29 }
  0x3e   :  { %p3725_p0 = por %p3724_p13, %p3723_p12 }
  0x40   :  { %p3726_p1 = pnand %p3725_p0, %p3719_p11 }
  0x42   :  { %3729 = shalt.err (!%p3726_p1)
}
  0x43   :  { %s3770_s2 = smov 64   ;;  %s3771_s30 = smov 4  }
  0x44   :  { %82 = dma.hbm_to_vmem [thread:$0]  %s3903_s5, 8192, %s77_s26, [#allocation12], %s3770_s2, %s3770_s2, %s3771_s30  }
  0x45   :  { %3750 = dma.done.wait [#allocation3], 128  }
  0x46   :  { %3751 = vsyncadd [#allocation3], 4294967168 }
  0x47   :  { %3752 = dma.done.wait [#allocation6], 4160  }
  0x48   :  { %3753 = vsyncadd [#allocation6], 4294963136 }
  0x49   :  { %3754 = dma.done.wait [#allocation9], 32896  }
  0x4a   :  { %3755 = vsyncadd [#allocation9], 4294934400 }
  0x4b   :  { %3756 = dma.done.wait [#allocation12], 8192  }
  0x4c   :  { %3757 = vsyncadd [#allocation12], 4294959104  ;;  %v3772_v0 = vmov 0   ;;  %v3494_v1 = vld [vmem:[#allocation5 + $0xe4] ss:$16 sps:$4 sm:$0xff]   ;;  %v104_v37 = vld [vmem:[#allocation2] sm:$0xff] }
  0x4d   :  { %352 = vmatprep.mubr.bf16.mxu0 %v3772_v0  ;;  %393 = vmatprep.mubr.bf16.mxu1 %v3772_v0  ;;  %v3496_v2 = vld [vmem:[#allocation5 + $0xec] ss:$16 sps:$4 sm:$0xff]   ;;  %v3498_v3 = vld [vmem:[#allocation5 + $0xe0] ss:$16 sps:$4 sm:$0xff]   ;;  %v3499_v4 = vld [vmem:[#allocation5 + $0xe8] ss:$16 sps:$4 sm:$0xff]   ;;  %v105_v44 = vpack.c.bf16 %v104_v37, %v104_v37 }
  0x4e   :  { %320 = vmatprep.subr.bf16.mxu0 %v3494_v1  ;;  %361 = vmatprep.subr.bf16.mxu1 %v3496_v2  ;;  %v3500_v5 = vld [vmem:[#allocation5 + $0xc4] ss:$16 sps:$4 sm:$0xff]   ;;  %v3502_v6 = vld [vmem:[#allocation5 + $0xcc] ss:$16 sps:$4 sm:$0xff]   ;;  %v3504_v7 = vld [vmem:[#allocation5 + $0xc0] ss:$16 sps:$4 sm:$0xff]  }
  0x4f   :  { %321 = vmatpush1.bf16.msra.mxu0 %v3498_v3  ;;  %362 = vmatpush1.bf16.msra.mxu1 %v3499_v4  ;;  %v3505_v8 = vld [vmem:[#allocation5 + $0xc8] ss:$16 sps:$4 sm:$0xff]   ;;  %v3506_v9 = vld [vmem:[#allocation5 + $0xa4] ss:$16 sps:$4 sm:$0xff]   ;;  %v3508_v10 = vld [vmem:[#allocation5 + $0xac] ss:$16 sps:$4 sm:$0xff]  }
  0x50   :  { %322 = vmatprep.subr.bf16.mxu0 %v3500_v5  ;;  %363 = vmatprep.subr.bf16.mxu1 %v3502_v6  ;;  %v3510_v11 = vld [vmem:[#allocation5 + $0xa0] ss:$16 sps:$4 sm:$0xff]   ;;  %v3511_v12 = vld [vmem:[#allocation5 + $0xa8] ss:$16 sps:$4 sm:$0xff]   ;;  %v3512_v13 = vld [vmem:[#allocation5 + $0x84] ss:$16 sps:$4 sm:$0xff]  }
  0x51   :  { %v3514_v14 = vld [vmem:[#allocation5 + $0x8c] ss:$16 sps:$4 sm:$0xff]   ;;  %v3516_v15 = vld [vmem:[#allocation5 + $0x80] ss:$16 sps:$4 sm:$0xff]   ;;  %v3517_v16 = vld [vmem:[#allocation5 + $0x88] ss:$16 sps:$4 sm:$0xff]  }
  0x52   :  { %v3518_v17 = vld [vmem:[#allocation5 + $0x64] ss:$16 sps:$4 sm:$0xff]   ;;  %v3520_v18 = vld [vmem:[#allocation5 + $0x6c] ss:$16 sps:$4 sm:$0xff]   ;;  %v3522_v19 = vld [vmem:[#allocation5 + $0x60] ss:$16 sps:$4 sm:$0xff]  }
  0x53   :  { %323 = vmatpush1.bf16.msra.mxu0 %v3504_v7  ;;  %364 = vmatpush1.bf16.msra.mxu1 %v3505_v8  ;;  %v3523_v20 = vld [vmem:[#allocation5 + $0x68] ss:$16 sps:$4 sm:$0xff]   ;;  %v3524_v21 = vld [vmem:[#allocation5 + $0x44] ss:$16 sps:$4 sm:$0xff]   ;;  %v3526_v22 = vld [vmem:[#allocation5 + $0x4c] ss:$16 sps:$4 sm:$0xff]  }
  0x54   :  { %324 = vmatprep.subr.bf16.mxu0 %v3506_v9  ;;  %365 = vmatprep.subr.bf16.mxu1 %v3508_v10  ;;  %v3528_v23 = vld [vmem:[#allocation5 + $0x40] ss:$16 sps:$4 sm:$0xff]   ;;  %v3529_v24 = vld [vmem:[#allocation5 + $0x48] ss:$16 sps:$4 sm:$0xff]   ;;  %v3530_v25 = vld [vmem:[#allocation5 + $0x24] ss:$16 sps:$4 sm:$0xff]  }
  0x55   :  { %v3532_v26 = vld [vmem:[#allocation5 + $0x2c] ss:$16 sps:$4 sm:$0xff]   ;;  %v3534_v27 = vld [vmem:[#allocation5 + $0x20] ss:$16 sps:$4 sm:$0xff]   ;;  %v3535_v28 = vld [vmem:[#allocation5 + $0x28] ss:$16 sps:$4 sm:$0xff]  }
  0x56   :  { %v3536_v29 = vld [vmem:[#allocation5 + $0x4] ss:$16 sps:$4 sm:$0xff]   ;;  %v3538_v30 = vld [vmem:[#allocation5 + $0xc] ss:$16 sps:$4 sm:$0xff]   ;;  %v3540_v35 = vld [vmem:[#allocation5] ss:$16 sps:$4 sm:$0xff]  }
  0x57   :  { %325 = vmatpush1.bf16.msra.mxu0 %v3510_v11  ;;  %366 = vmatpush1.bf16.msra.mxu1 %v3511_v12  ;;  %v466_v31 = vld [vmem:[#allocation8 + $0x1c0] sm:$0xff] }
  0x58   :  { %326 = vmatprep.subr.bf16.mxu0 %v3512_v13  ;;  %367 = vmatprep.subr.bf16.mxu1 %v3514_v14  ;;  %v470_v32 = vld [vmem:[#allocation8 + $0x1e0] sm:$0xff] }
  0x59   :  { %v594_v33 = vld [vmem:[#allocation8 + $0x5c0] sm:$0xff]  ;;  %v3128_v38 = vcombine.high %v466_v31, %v470_v32  ;;  %v3127_v45 = vcombine.low %v466_v31, %v470_v32 }
  0x5a   :  { %v598_v34 = vld [vmem:[#allocation8 + $0x5e0] sm:$0xff] }
  0x5b   :  { %327 = vmatpush1.bf16.msra.mxu0 %v3516_v15  ;;  %368 = vmatpush1.bf16.msra.mxu1 %v3517_v16  ;;  %v3541_v36 = vld [vmem:[#allocation5 + $0x8] ss:$16 sps:$4 sm:$0xff]   ;;  %v3256_v39 = vcombine.high %v594_v33, %v598_v34  ;;  %v3255_v46 = vcombine.low %v594_v33, %v598_v34 }
  0x5c   :  { %328 = vmatprep.subr.bf16.mxu0 %v3518_v17  ;;  %369 = vmatprep.subr.bf16.mxu1 %v3520_v18  ;;  %v458_v40 = vld [vmem:[#allocation8 + $0x180] sm:$0xff] }
  0x5d   :  { %v462_v41 = vld [vmem:[#allocation8 + $0x1a0] sm:$0xff] }
  0x5e   :  { %v586_v42 = vld [vmem:[#allocation8 + $0x580] sm:$0xff]  ;;  %v3120_v47 = vcombine.high %v458_v40, %v462_v41  ;;  %v3119_v53 = vcombine.low %v458_v40, %v462_v41 }
  0x5f   :  { %329 = vmatpush1.bf16.msra.mxu0 %v3522_v19  ;;  %370 = vmatpush1.bf16.msra.mxu1 %v3523_v20  ;;  %v590_v43 = vld [vmem:[#allocation8 + $0x5a0] sm:$0xff] }
  0x60   :  { %330 = vmatprep.subr.bf16.mxu0 %v3524_v21  ;;  %371 = vmatprep.subr.bf16.mxu1 %v3526_v22  ;;  %v3248_v48 = vcombine.high %v586_v42, %v590_v43  ;;  %v450_v49 = vld [vmem:[#allocation8 + $0x140] sm:$0xff]  ;;  %v3247_v54 = vcombine.low %v586_v42, %v590_v43 }
  0x61   :  { %v454_v50 = vld [vmem:[#allocation8 + $0x160] sm:$0xff] }
  0x62   :  { %v578_v51 = vld [vmem:[#allocation8 + $0x540] sm:$0xff]  ;;  %v3112_v55 = vcombine.high %v450_v49, %v454_v50  ;;  %v3111_v61 = vcombine.low %v450_v49, %v454_v50 }
  0x63   :  { %331 = vmatpush1.bf16.msra.mxu0 %v3528_v23  ;;  %372 = vmatpush1.bf16.msra.mxu1 %v3529_v24  ;;  %v582_v52 = vld [vmem:[#allocation8 + $0x560] sm:$0xff] }
  0x64   :  { %332 = vmatprep.subr.bf16.mxu0 %v3530_v25  ;;  %373 = vmatprep.subr.bf16.mxu1 %v3532_v26  ;;  %v3240_v56 = vcombine.high %v578_v51, %v582_v52  ;;  %v442_v57 = vld [vmem:[#allocation8 + $0x100] sm:$0xff]  ;;  %v3239_v62 = vcombine.low %v578_v51, %v582_v52 }
  0x65   :  { %v446_v58 = vld [vmem:[#allocation8 + $0x120] sm:$0xff] }
  0x66   :  { %v570_v59 = vld [vmem:[#allocation8 + $0x500] sm:$0xff]  ;;  %v3104_v3 = vcombine.high %v442_v57, %v446_v58  ;;  %v3103_v5 = vcombine.low %v442_v57, %v446_v58 }
  0x67   :  { %333 = vmatpush1.bf16.msra.mxu0 %v3534_v27  ;;  %374 = vmatpush1.bf16.msra.mxu1 %v3535_v28  ;;  %v574_v60 = vld [vmem:[#allocation8 + $0x520] sm:$0xff] }
  0x68   :  { %334 = vmatprep.subr.bf16.mxu0 %v3536_v29  ;;  %375 = vmatprep.subr.bf16.mxu1 %v3538_v30  ;;  %v434_v63 = vld [vmem:[#allocation8 + $0xc0] sm:$0xff]  ;;  %v3232_v4 = vcombine.high %v570_v59, %v574_v60  ;;  %v3231_v6 = vcombine.low %v570_v59, %v574_v60 }
  0x69   :  { %v438_v0 = vld [vmem:[#allocation8 + $0xe0] sm:$0xff] }
  0x6a   :  { %v562_v1 = vld [vmem:[#allocation8 + $0x4c0] sm:$0xff]  ;;  %v3096_v11 = vcombine.high %v434_v63, %v438_v0  ;;  %v3095_v13 = vcombine.low %v434_v63, %v438_v0 }
  0x6b   :  { %335 = vmatpush1.bf16.msra.mxu0 %v3540_v35  ;;  %376 = vmatpush1.bf16.msra.mxu1 %v3541_v36  ;;  %v566_v2 = vld [vmem:[#allocation8 + $0x4e0] sm:$0xff] }
  0x6c   :  { %1988 = vmatprep.subr.bf16.mxu0 %v3128_v38  ;;  %2029 = vmatprep.subr.bf16.mxu1 %v3256_v39  ;;  %v426_v7 = vld [vmem:[#allocation8 + $0x80] sm:$0xff]  ;;  %v3224_v12 = vcombine.high %v562_v1, %v566_v2  ;;  %v3223_v14 = vcombine.low %v562_v1, %v566_v2 }
  0x6d   :  { %v430_v8 = vld [vmem:[#allocation8 + $0xa0] sm:$0xff] }
  0x6e   :  { %353 = vmatmul.mubr.bf16.vlgmr.msra.gmra.mxu0 %v105_v44  ;;  %394 = vmatmul.mubr.bf16.vlgmr.msra.gmra.mxu1 %v105_v44  ;;  %v554_v9 = vld [vmem:[#allocation8 + $0x480] sm:$0xff]  ;;  %v3088_v19 = vcombine.high %v426_v7, %v430_v8  ;;  %v3087_v21 = vcombine.low %v426_v7, %v430_v8 }
  0x6f   :  { %1989 = vmatpush1.bf16.msra.mxu0 %v3127_v45  ;;  %2030 = vmatpush1.bf16.msra.mxu1 %v3255_v46  ;;  %v558_v10 = vld [vmem:[#allocation8 + $0x4a0] sm:$0xff] }
  0x70   :  { %1990 = vmatprep.subr.bf16.mxu0 %v3120_v47  ;;  %2031 = vmatprep.subr.bf16.mxu1 %v3248_v48  ;;  %v418_v15 = vld [vmem:[#allocation8 + $0x40] sm:$0xff]  ;;  %v3216_v20 = vcombine.high %v554_v9, %v558_v10  ;;  %v3215_v22 = vcombine.low %v554_v9, %v558_v10 }
  0x71   :  { %v422_v16 = vld [vmem:[#allocation8 + $0x60] sm:$0xff] }
  0x72   :  { %v546_v17 = vld [vmem:[#allocation8 + $0x440] sm:$0xff]  ;;  %v3080_v27 = vcombine.high %v418_v15, %v422_v16  ;;  %v3079_v29 = vcombine.low %v418_v15, %v422_v16 }
  0x73   :  { %1991 = vmatpush1.bf16.msra.mxu0 %v3119_v53  ;;  %2032 = vmatpush1.bf16.msra.mxu1 %v3247_v54  ;;  %v550_v18 = vld [vmem:[#allocation8 + $0x460] sm:$0xff] }
  0x74   :  { %1992 = vmatprep.subr.bf16.mxu0 %v3112_v55  ;;  %2033 = vmatprep.subr.bf16.mxu1 %v3240_v56  ;;  %v410_v23 = vld [vmem:[#allocation8] sm:$0xff]  ;;  %v3208_v28 = vcombine.high %v546_v17, %v550_v18  ;;  %v3207_v30 = vcombine.low %v546_v17, %v550_v18 }
  0x75   :  { %v414_v24 = vld [vmem:[#allocation8 + $0x20] sm:$0xff] }
  0x76   :  { %v538_v25 = vld [vmem:[#allocation8 + $0x400] sm:$0xff]  ;;  %v3072_v35 = vcombine.high %v410_v23, %v414_v24  ;;  %v3071_v37 = vcombine.low %v410_v23, %v414_v24 }
  0x77   :  { %1993 = vmatpush1.bf16.msra.mxu0 %v3111_v61  ;;  %2034 = vmatpush1.bf16.msra.mxu1 %v3239_v62  ;;  %v542_v26 = vld [vmem:[#allocation8 + $0x420] sm:$0xff] }
  0x78   :  { %1994 = vmatprep.subr.bf16.mxu0 %v3104_v3  ;;  %2035 = vmatprep.subr.bf16.mxu1 %v3232_v4  ;;  %v530_v31 = vld [vmem:[#allocation8 + $0x3c0] sm:$0xff]  ;;  %v3200_v36 = vcombine.high %v538_v25, %v542_v26  ;;  %v3199_v38 = vcombine.low %v538_v25, %v542_v26 }
  0x79   :  { %v534_v32 = vld [vmem:[#allocation8 + $0x3e0] sm:$0xff] }
  0x7a   :  { %v658_v33 = vld [vmem:[#allocation8 + $0x7c0] sm:$0xff]  ;;  %v3192_v43 = vcombine.high %v530_v31, %v534_v32  ;;  %v3191_v45 = vcombine.low %v530_v31, %v534_v32 }
  0x7b   :  { %1995 = vmatpush1.bf16.msra.mxu0 %v3103_v5  ;;  %2036 = vmatpush1.bf16.msra.mxu1 %v3231_v6  ;;  %v662_v34 = vld [vmem:[#allocation8 + $0x7e0] sm:$0xff] }
  0x7c   :  { %1996 = vmatprep.subr.bf16.mxu0 %v3096_v11  ;;  %2037 = vmatprep.subr.bf16.mxu1 %v3224_v12  ;;  %v522_v39 = vld [vmem:[#allocation8 + $0x380] sm:$0xff]  ;;  %v3320_v44 = vcombine.high %v658_v33, %v662_v34  ;;  %v3319_v46 = vcombine.low %v658_v33, %v662_v34 }
  0x7d   :  { %v526_v40 = vld [vmem:[#allocation8 + $0x3a0] sm:$0xff] }
  0x7e   :  { %v650_v41 = vld [vmem:[#allocation8 + $0x780] sm:$0xff]  ;;  %v3184_v51 = vcombine.high %v522_v39, %v526_v40  ;;  %v3183_v53 = vcombine.low %v522_v39, %v526_v40  ;;  %v599_v39 = vld [vmem:[#allocation8 + $0x5e8] sm:$0xff] }
  0x7f   :  { %1997 = vmatpush1.bf16.msra.mxu0 %v3095_v13  ;;  %2038 = vmatpush1.bf16.msra.mxu1 %v3223_v14  ;;  %v654_v42 = vld [vmem:[#allocation8 + $0x7a0] sm:$0xff] }
  0x80   :  { %1998 = vmatprep.subr.bf16.mxu0 %v3088_v19  ;;  %2039 = vmatprep.subr.bf16.mxu1 %v3216_v20  ;;  %v514_v47 = vld [vmem:[#allocation8 + $0x340] sm:$0xff]  ;;  %v3312_v52 = vcombine.high %v650_v41, %v654_v42  ;;  %v3311_v54 = vcombine.low %v650_v41, %v654_v42 }
  0x81   :  { %v518_v48 = vld [vmem:[#allocation8 + $0x360] sm:$0xff] }
  0x82   :  { %v642_v49 = vld [vmem:[#allocation8 + $0x740] sm:$0xff]  ;;  %v3176_v59 = vcombine.high %v514_v47, %v518_v48  ;;  %v3175_v61 = vcombine.low %v514_v47, %v518_v48  ;;  %v138_v47 = vld [vmem:[#allocation7] sm:$0xf] }
  0x83   :  { %1999 = vmatpush1.bf16.msra.mxu0 %v3087_v21  ;;  %2040 = vmatpush1.bf16.msra.mxu1 %v3215_v22  ;;  %v646_v50 = vld [vmem:[#allocation8 + $0x760] sm:$0xff] }
  0x84   :  { %2000 = vmatprep.subr.bf16.mxu0 %v3080_v27  ;;  %2041 = vmatprep.subr.bf16.mxu1 %v3208_v28  ;;  %v506_v55 = vld [vmem:[#allocation8 + $0x300] sm:$0xff]  ;;  %v3304_v60 = vcombine.high %v642_v49, %v646_v50  ;;  %v3303_v62 = vcombine.low %v642_v49, %v646_v50 }
  0x85   :  { %v510_v56 = vld [vmem:[#allocation8 + $0x320] sm:$0xff] }
  0x86   :  { %v634_v57 = vld [vmem:[#allocation8 + $0x700] sm:$0xff]  ;;  %v3168_v3 = vcombine.high %v506_v55, %v510_v56  ;;  %v3167_v5 = vcombine.low %v506_v55, %v510_v56 }
  0x87   :  { %2001 = vmatpush1.bf16.msra.mxu0 %v3079_v29  ;;  %2042 = vmatpush1.bf16.msra.mxu1 %v3207_v30  ;;  %v638_v58 = vld [vmem:[#allocation8 + $0x720] sm:$0xff] }
  0x88   :  { %2002 = vmatprep.subr.bf16.mxu0 %v3072_v35  ;;  %2043 = vmatprep.subr.bf16.mxu1 %v3200_v36  ;;  %v498_v63 = vld [vmem:[#allocation8 + $0x2c0] sm:$0xff]  ;;  %v3296_v4 = vcombine.high %v634_v57, %v638_v58  ;;  %v3295_v6 = vcombine.low %v634_v57, %v638_v58  ;;  %v467_v35 = vld [vmem:[#allocation8 + $0x1c8] sm:$0xff] }
  0x89   :  { %v502_v0 = vld [vmem:[#allocation8 + $0x2e0] sm:$0xff]  ;;  %v471_v36 = vld [vmem:[#allocation8 + $0x1e8] sm:$0xff] }
  0x8a   :  { %v626_v1 = vld [vmem:[#allocation8 + $0x6c0] sm:$0xff]  ;;  %v3160_v11 = vcombine.high %v498_v63, %v502_v0  ;;  %v3159_v13 = vcombine.low %v498_v63, %v502_v0  ;;  %v3129_v40 = vcombine.low %v467_v35, %v471_v36 }
  0x8b   :  { %2003 = vmatpush1.bf16.msra.mxu0 %v3071_v37  ;;  %2044 = vmatpush1.bf16.msra.mxu1 %v3199_v38  ;;  %v630_v2 = vld [vmem:[#allocation8 + $0x6e0] sm:$0xff]  ;;  %v595_v37 = vld [vmem:[#allocation8 + $0x5c8] sm:$0xff]  ;;  %v3130_v38 = vcombine.high %v467_v35, %v471_v36 }
  0x8c   :  { %2004 = vmatprep.subr.bf16.mxu0 %v3192_v43  ;;  %2045 = vmatprep.subr.bf16.mxu1 %v3320_v44  ;;  %v490_v7 = vld [vmem:[#allocation8 + $0x280] sm:$0xff]  ;;  %v3288_v12 = vcombine.high %v626_v1, %v630_v2  ;;  %v3287_v14 = vcombine.low %v626_v1, %v630_v2  ;;  %v3257_v41 = vcombine.low %v595_v37, %v599_v39  ;;  %v140_v43 = vlaneseq  ;;  %v567_v35 = vld [vmem:[#allocation8 + $0x4e8] sm:$0xff] }
  0x8d   :  { %v494_v8 = vld [vmem:[#allocation8 + $0x2a0] sm:$0xff]  ;;  %v3258_v42 = vcombine.high %v595_v37, %v599_v39 }
  0x8e   :  { %v618_v9 = vld [vmem:[#allocation8 + $0x680] sm:$0xff]  ;;  %v3152_v15 = vcombine.high %v490_v7, %v494_v8  ;;  %v3151_v17 = vcombine.low %v490_v7, %v494_v8  ;;  %v3832_v44 = vshrl.u32 %v140_v43, 7  ;;  %v463_v8 = vld [vmem:[#allocation8 + $0x1a8] sm:$0xff] }
  0x8f   :  { %2005 = vmatpush2.bf16.msra.mxu0 %v3191_v45  ;;  %2046 = vmatpush2.bf16.msra.mxu1 %v3319_v46  ;;  %v622_v10 = vld [vmem:[#allocation8 + $0x6a0] sm:$0xff]  ;;  %v559_v43 = vld [vmem:[#allocation8 + $0x4a8] sm:$0xff] }
  0x90   :  { %2006 = vmatprep.subr.bf16.mxu0 %v3184_v51  ;;  %2047 = vmatprep.subr.bf16.mxu1 %v3312_v52  ;;  %v3280_v16 = vcombine.high %v618_v9, %v622_v10  ;;  %v3279_v18 = vcombine.low %v618_v9, %v622_v10  ;;  %v482_v19 = vld [vmem:[#allocation8 + $0x240] sm:$0xff]  ;;  %v142_v45 = vsub.s32 0, %v3832_v44  ;;  %v150_v46 = vsub.s32 2, %v3832_v44  ;;  %v587_v9 = vld [vmem:[#allocation8 + $0x588] sm:$0xff] }
  0x91   :  { %v486_v20 = vld [vmem:[#allocation8 + $0x260] sm:$0xff]  ;;  %v146_v48 = vsub.s32 1, %v3832_v44  ;;  %v154_v49 = vsub.s32 3, %v3832_v44  ;;  %v591_v10 = vld [vmem:[#allocation8 + $0x5a8] sm:$0xff] }
  0x92   :  { %v610_v21 = vld [vmem:[#allocation8 + $0x640] sm:$0xff]  ;;  %v3144_v22 = vcombine.high %v482_v19, %v486_v20  ;;  %v3143_v24 = vcombine.low %v482_v19, %v486_v20  ;;  %v143_v50 = vrot.slane %v138_v47, %v142_v45  ;;  %v151_v51 = vrot.slane %v138_v47, %v150_v46  ;;  %v583_v19 = vld [vmem:[#allocation8 + $0x568] sm:$0xff] }
  0x93   :  { %2007 = vmatpush2.bf16.msra.mxu0 %v3183_v53  ;;  %2048 = vmatpush2.bf16.msra.mxu1 %v3311_v54  ;;  %v614_v23 = vld [vmem:[#allocation8 + $0x660] sm:$0xff]  ;;  %v147_v52 = vrot.slane %v138_v47, %v146_v48  ;;  %v155_v53 = vrot.slane %v138_v47, %v154_v49 }
  0x94   :  { %2008 = vmatprep.subr.bf16.mxu0 %v3176_v59  ;;  %2049 = vmatprep.subr.bf16.mxu1 %v3304_v60  ;;  %v3271_v25 = vcombine.low %v610_v21, %v614_v23  ;;  %v3272_v26 = vcombine.high %v610_v21, %v614_v23  ;;  %v474_v27 = vld [vmem:[#allocation8 + $0x200] sm:$0xff]  ;;  %v3249_v21 = vcombine.low %v587_v9, %v591_v10 }
  0x95   :  { %v478_v28 = vld [vmem:[#allocation8 + $0x220] sm:$0xff] }
  0x96   :  { %v602_v29 = vld [vmem:[#allocation8 + $0x600] sm:$0xff]  ;;  %v3136_v30 = vcombine.high %v474_v27, %v478_v28  ;;  %v3135_v32 = vcombine.low %v474_v27, %v478_v28  ;;  %v575_v27 = vld [vmem:[#allocation8 + $0x528] sm:$0xff] }
  0x97   :  { %2009 = vmatpush2.bf16.msra.mxu0 %v3175_v61  ;;  %2050 = vmatpush2.bf16.msra.mxu1 %v3303_v62  ;;  %v606_v31 = vld [vmem:[#allocation8 + $0x620] sm:$0xff] }
  0x98   :  { %2010 = vmatprep.subr.bf16.mxu0 %v3168_v3  ;;  %2051 = vmatprep.subr.bf16.mxu1 %v3296_v4  ;;  %v3263_v33 = vcombine.low %v602_v29, %v606_v31  ;;  %v3264_v34 = vcombine.high %v602_v29, %v606_v31  ;;  %v459_v4 = vld [vmem:[#allocation8 + $0x188] sm:$0xff] }
  0x99   :  { %v3121_v20 = vcombine.low %v459_v4, %v463_v8 }
  0x9b   :  { %2011 = vmatpush2.bf16.msra.mxu0 %v3167_v5  ;;  %2052 = vmatpush2.bf16.msra.mxu1 %v3295_v6 }
  0x9c   :  { %2012 = vmatprep.subr.bf16.mxu0 %v3160_v11  ;;  %2053 = vmatprep.subr.bf16.mxu1 %v3288_v12 }
  0x9f   :  { %2013 = vmatpush2.bf16.msra.mxu0 %v3159_v13  ;;  %2054 = vmatpush2.bf16.msra.mxu1 %v3287_v14  ;;  %v451_v14 = vld [vmem:[#allocation8 + $0x148] sm:$0xff] }
  0xa0   :  { %2014 = vmatprep.subr.bf16.mxu0 %v3152_v15  ;;  %2055 = vmatprep.subr.bf16.mxu1 %v3280_v16  ;;  %v3122_v15 = vcombine.high %v459_v4, %v463_v8  ;;  %v3250_v16 = vcombine.high %v587_v9, %v591_v10  ;;  %v659_v8 = vld [vmem:[#allocation8 + $0x7c8] sm:$0xff] }
  0xa1   :  { %v663_v9 = vld [vmem:[#allocation8 + $0x7e8] sm:$0xff] }
  0xa3   :  { %2015 = vmatpush2.bf16.msra.mxu0 %v3151_v17  ;;  %2056 = vmatpush2.bf16.msra.mxu1 %v3279_v18  ;;  %v455_v17 = vld [vmem:[#allocation8 + $0x168] sm:$0xff] }
  0xa4   :  { %2016 = vmatprep.subr.bf16.mxu0 %v3144_v22  ;;  %2057 = vmatprep.subr.bf16.mxu1 %v3272_v26  ;;  %v579_v18 = vld [vmem:[#allocation8 + $0x548] sm:$0xff]  ;;  %v3114_v22 = vcombine.high %v451_v14, %v455_v17  ;;  %v3113_v28 = vcombine.low %v451_v14, %v455_v17 }
  0xa5   :  { %v3242_v23 = vcombine.high %v579_v18, %v583_v19  ;;  %v571_v26 = vld [vmem:[#allocation8 + $0x508] sm:$0xff]  ;;  %v3241_v29 = vcombine.low %v579_v18, %v583_v19 }
  0xa6   :  { %v3234_v31 = vcombine.high %v571_v26, %v575_v27  ;;  %v3233_v37 = vcombine.low %v571_v26, %v575_v27  ;;  %v523_v17 = vld [vmem:[#allocation8 + $0x388] sm:$0xff] }
  0xa7   :  { %2017 = vmatpush2.bf16.msra.mxu0 %v3143_v24  ;;  %2058 = vmatpush2.bf16.msra.mxu1 %v3271_v25  ;;  %v443_v24 = vld [vmem:[#allocation8 + $0x108] sm:$0xff] }
  0xa8   :  { %2018 = vmatprep.subr.bf16.mxu0 %v3136_v30  ;;  %2059 = vmatprep.subr.bf16.mxu1 %v3264_v34  ;;  %v447_v25 = vld [vmem:[#allocation8 + $0x128] sm:$0xff] }
  0xa9   :  { %v3106_v30 = vcombine.high %v443_v24, %v447_v25  ;;  %v563_v34 = vld [vmem:[#allocation8 + $0x4c8] sm:$0xff]  ;;  %v3105_v36 = vcombine.low %v443_v24, %v447_v25 }
  0xaa   :  { %v3226_v39 = vcombine.high %v563_v34, %v567_v35  ;;  %v527_v18 = vld [vmem:[#allocation8 + $0x3a8] sm:$0xff] }
  0xab   :  { %2019 = vmatpush2.bf16.msra.mxu0 %v3135_v32  ;;  %2060 = vmatpush2.bf16.msra.mxu1 %v3263_v33  ;;  %v435_v32 = vld [vmem:[#allocation8 + $0xc8] sm:$0xff] }
  0xac   :  { %2070 = vmatprep.subr.bf16.mxu0 %v3130_v38  ;;  %2111 = vmatprep.subr.bf16.mxu1 %v3258_v42  ;;  %v439_v33 = vld [vmem:[#allocation8 + $0xe8] sm:$0xff] }
  0xad   :  { %v3098_v38 = vcombine.high %v435_v32, %v439_v33  ;;  %v555_v42 = vld [vmem:[#allocation8 + $0x488] sm:$0xff]  ;;  %v3097_v47 = vcombine.low %v435_v32, %v439_v33 }
  0xae   :  { %v651_v19 = vld [vmem:[#allocation8 + $0x788] sm:$0xff] }
  0xaf   :  { %v515_v25 = vld [vmem:[#allocation8 + $0x348] sm:$0xff] }
  0xb0   :  { %v519_v26 = vld [vmem:[#allocation8 + $0x368] sm:$0xff] }
  0xb1   :  { %v643_v27 = vld [vmem:[#allocation8 + $0x748] sm:$0xff] }
  0xb2   :  { %v507_v33 = vld [vmem:[#allocation8 + $0x308] sm:$0xff] }
 0x12e   :  { %v354_v54 = vpop.f32.mrf.mxu0  ;;  %v395_v55 = vpop.f32.mrf.mxu1 }
 0x12f   :  { %v355_v56 = vadd.f32 %v354_v54, %v143_v50  ;;  %v396_v57 = vadd.f32 %v395_v55, %v151_v51  ;;  %v3225_v50 = vcombine.low %v563_v34, %v567_v35  ;;  %v423_v54 = vld [vmem:[#allocation8 + $0x68] sm:$0xff] }
 0x130   :  { %v356_v58 = vpop.f32.mrf.mxu0  ;;  %v397_v59 = vpop.f32.mrf.mxu1  ;;  %v547_v55 = vld [vmem:[#allocation8 + $0x448] sm:$0xff] }
 0x131   :  { %v404_v60 = vmax.f32 %v396_v57, 0.0  ;;  %v357_v61 = vadd.f32 %v356_v58, %v147_v52  ;;  %v398_v62 = vadd.f32 %v397_v59, %v155_v53  ;;  %v402_v63 = vmax.f32 %v355_v56, 0.0  ;;  %v419_v53 = vld [vmem:[#allocation8 + $0x48] sm:$0xff] }
 0x132   :  { %v358_v0 = vpop.f32.mrf.mxu0  ;;  %v399_v1 = vpop.f32.mrf.mxu1  ;;  %v3218_v52 = vcombine.high %v555_v42, %v559_v43  ;;  %v551_v56 = vld [vmem:[#allocation8 + $0x468] sm:$0xff]  ;;  %v3217_v58 = vcombine.low %v555_v42, %v559_v43  ;;  %v3082_v59 = vcombine.high %v419_v53, %v423_v54 }
 0x133   :  { %v403_v2 = vmax.f32 %v357_v61, 0.0  ;;  %v405_v3 = vmax.f32 %v398_v62, 0.0  ;;  %v3846_v5 = vpack.c.bf16 %v404_v60, %v404_v60  ;;  %v3852_v13 = vpack.c.bf16 %v402_v63, %v402_v63  ;;  %v411_v61 = vld [vmem:[#allocation8 + $0x8] sm:$0xff] }
 0x134   :  { %v359_v6 = vpop.f32.mrf.mxu0  ;;  %v400_v7 = vpop.f32.mrf.mxu1  ;;  %v3210_v60 = vcombine.high %v547_v55, %v551_v56  ;;  %v415_v62 = vld [vmem:[#allocation8 + $0x28] sm:$0xff]  ;;  %v3081_v1 = vcombine.low %v419_v53, %v423_v54 }
 0x135   :  { %v3848_v11 = vpack.c.bf16 %v403_v2, %v403_v2  ;;  %v3850_v12 = vpack.c.bf16 %v405_v3, %v405_v3  ;;  %v539_v63 = vld [vmem:[#allocation8 + $0x408] sm:$0xff]  ;;  %v3209_v2 = vcombine.low %v547_v55, %v551_v56  ;;  %v3074_v3 = vcombine.high %v411_v61, %v415_v62 }
 0x136   :  { %v543_v0 = vld [vmem:[#allocation8 + $0x428] sm:$0xff]  ;;  %v3073_v10 = vcombine.low %v411_v61, %v415_v62 }
 0x137   :  { %2020 = vmatprep.mubr.bf16.mxu0 %v3848_v11  ;;  %2061 = vmatprep.mubr.bf16.mxu1 %v3850_v12  ;;  %v3202_v4 = vcombine.high %v539_v63, %v543_v0  ;;  %v531_v6 = vld [vmem:[#allocation8 + $0x3c8] sm:$0xff]  ;;  %v3201_v14 = vcombine.low %v539_v63, %v543_v0 }
 0x138   :  { %2021 = vmatmul.mubr.bf16.vlgmr.msra.gmra.mxu0 %v3852_v13  ;;  %2062 = vmatmul.mubr.bf16.vlgmr.msra.gmra.mxu1 %v3846_v5  ;;  %v535_v7 = vld [vmem:[#allocation8 + $0x3e8] sm:$0xff] }
 0x139   :  { %2071 = vmatpush1.bf16.msra.mxu0 %v3129_v40  ;;  %2112 = vmatpush1.bf16.msra.mxu1 %v3257_v41  ;;  %v427_v40 = vld [vmem:[#allocation8 + $0x88] sm:$0xff] }
 0x13a   :  { %2102 = vmatprep.mubr.bf16.mxu0 %v3848_v11  ;;  %2143 = vmatprep.mubr.bf16.mxu1 %v3850_v12  ;;  %v431_v41 = vld [vmem:[#allocation8 + $0xa8] sm:$0xff] }
 0x13b   :  { %2072 = vmatprep.subr.bf16.mxu0 %v3122_v15  ;;  %2113 = vmatprep.subr.bf16.mxu1 %v3250_v16  ;;  %v3090_v51 = vcombine.high %v427_v40, %v431_v41  ;;  %v3089_v57 = vcombine.low %v427_v40, %v431_v41  ;;  %v3194_v15 = vcombine.high %v531_v6, %v535_v7  ;;  %v511_v34 = vld [vmem:[#allocation8 + $0x328] sm:$0xff] }
 0x13c   :  { %v3322_v16 = vcombine.high %v659_v8, %v663_v9  ;;  %v635_v35 = vld [vmem:[#allocation8 + $0x708] sm:$0xff] }
 0x13d   :  { %2073 = vmatpush1.bf16.msra.mxu0 %v3121_v20  ;;  %2114 = vmatpush1.bf16.msra.mxu1 %v3249_v21  ;;  %v655_v20 = vld [vmem:[#allocation8 + $0x7a8] sm:$0xff]  ;;  %v3193_v21 = vcombine.low %v531_v6, %v535_v7 }
 0x13e   :  { %2074 = vmatprep.subr.bf16.mxu0 %v3114_v22  ;;  %2115 = vmatprep.subr.bf16.mxu1 %v3242_v23  ;;  %v3321_v22 = vcombine.low %v659_v8, %v663_v9  ;;  %v3186_v23 = vcombine.high %v523_v17, %v527_v18  ;;  %v3314_v24 = vcombine.high %v651_v19, %v655_v20  ;;  %v499_v41 = vld [vmem:[#allocation8 + $0x2c8] sm:$0xff] }
 0x13f   :  { %v503_v42 = vld [vmem:[#allocation8 + $0x2e8] sm:$0xff] }
 0x140   :  { %v627_v43 = vld [vmem:[#allocation8 + $0x6c8] sm:$0xff] }
 0x141   :  { %2075 = vmatpush1.bf16.msra.mxu0 %v3113_v28  ;;  %2116 = vmatpush1.bf16.msra.mxu1 %v3241_v29  ;;  %v647_v28 = vld [vmem:[#allocation8 + $0x768] sm:$0xff]  ;;  %v3185_v29 = vcombine.low %v523_v17, %v527_v18  ;;  %v468_v18 = vld [vmem:[#allocation8 + $0x1d0] sm:$0xff] }
 0x142   :  { %2076 = vmatprep.subr.bf16.mxu0 %v3106_v30  ;;  %2117 = vmatprep.subr.bf16.mxu1 %v3234_v31  ;;  %v3313_v30 = vcombine.low %v651_v19, %v655_v20  ;;  %v3178_v31 = vcombine.high %v515_v25, %v519_v26  ;;  %v3306_v32 = vcombine.high %v643_v27, %v647_v28  ;;  %v491_v54 = vld [vmem:[#allocation8 + $0x288] sm:$0xff]  ;;  %v472_v19 = vld [vmem:[#allocation8 + $0x1f0] sm:$0xff] }
 0x143   :  { %v495_v55 = vld [vmem:[#allocation8 + $0x2a8] sm:$0xff]  ;;  %v596_v20 = vld [vmem:[#allocation8 + $0x5d0] sm:$0xff] }
 0x144   :  { %v619_v56 = vld [vmem:[#allocation8 + $0x688] sm:$0xff] }
 0x145   :  { %2077 = vmatpush1.bf16.msra.mxu0 %v3105_v36  ;;  %2118 = vmatpush1.bf16.msra.mxu1 %v3233_v37  ;;  %v639_v36 = vld [vmem:[#allocation8 + $0x728] sm:$0xff]  ;;  %v3177_v37 = vcombine.low %v515_v25, %v519_v26  ;;  %v460_v26 = vld [vmem:[#allocation8 + $0x190] sm:$0xff] }
 0x146   :  { %2078 = vmatprep.subr.bf16.mxu0 %v3098_v38  ;;  %2119 = vmatprep.subr.bf16.mxu1 %v3226_v39  ;;  %v3305_v38 = vcombine.low %v643_v27, %v647_v28  ;;  %v3170_v39 = vcombine.high %v507_v33, %v511_v34  ;;  %v3298_v40 = vcombine.high %v635_v35, %v639_v36  ;;  %v483_v62 = vld [vmem:[#allocation8 + $0x248] sm:$0xff]  ;;  %v464_v27 = vld [vmem:[#allocation8 + $0x1b0] sm:$0xff] }
 0x147   :  { %v487_v63 = vld [vmem:[#allocation8 + $0x268] sm:$0xff]  ;;  %v588_v28 = vld [vmem:[#allocation8 + $0x590] sm:$0xff] }
 0x148   :  { %v611_v0 = vld [vmem:[#allocation8 + $0x648] sm:$0xff] }
 0x149   :  { %2079 = vmatpush1.bf16.msra.mxu0 %v3097_v47  ;;  %2120 = vmatpush1.bf16.msra.mxu1 %v3225_v50  ;;  %v631_v47 = vld [vmem:[#allocation8 + $0x6e8] sm:$0xff]  ;;  %v3169_v50 = vcombine.low %v507_v33, %v511_v34  ;;  %v452_v34 = vld [vmem:[#allocation8 + $0x150] sm:$0xff] }
 0x14a   :  { %2080 = vmatprep.subr.bf16.mxu0 %v3090_v51  ;;  %2121 = vmatprep.subr.bf16.mxu1 %v3218_v52  ;;  %v3297_v51 = vcombine.low %v635_v35, %v639_v36  ;;  %v3162_v52 = vcombine.high %v499_v41, %v503_v42  ;;  %v3290_v53 = vcombine.high %v627_v43, %v631_v47  ;;  %v475_v7 = vld [vmem:[#allocation8 + $0x208] sm:$0xff]  ;;  %v456_v35 = vld [vmem:[#allocation8 + $0x170] sm:$0xff] }
 0x14b   :  { %v479_v8 = vld [vmem:[#allocation8 + $0x228] sm:$0xff]  ;;  %v580_v36 = vld [vmem:[#allocation8 + $0x550] sm:$0xff] }
 0x14c   :  { %v603_v9 = vld [vmem:[#allocation8 + $0x608] sm:$0xff] }
 0x14d   :  { %2081 = vmatpush1.bf16.msra.mxu0 %v3089_v57  ;;  %2122 = vmatpush1.bf16.msra.mxu1 %v3217_v58  ;;  %v623_v57 = vld [vmem:[#allocation8 + $0x6a8] sm:$0xff]  ;;  %v3161_v58 = vcombine.low %v499_v41, %v503_v42  ;;  %v444_v42 = vld [vmem:[#allocation8 + $0x110] sm:$0xff] }
 0x14e   :  { %2082 = vmatprep.subr.bf16.mxu0 %v3082_v59  ;;  %2123 = vmatprep.subr.bf16.mxu1 %v3210_v60  ;;  %v3289_v59 = vcombine.low %v627_v43, %v631_v47  ;;  %v3154_v60 = vcombine.high %v491_v54, %v495_v55  ;;  %v3282_v61 = vcombine.high %v619_v56, %v623_v57  ;;  %v448_v43 = vld [vmem:[#allocation8 + $0x130] sm:$0xff] }
 0x14f   :  { %v572_v47 = vld [vmem:[#allocation8 + $0x510] sm:$0xff] }
 0x151   :  { %2083 = vmatpush1.bf16.msra.mxu0 %v3081_v1  ;;  %2124 = vmatpush1.bf16.msra.mxu1 %v3209_v2  ;;  %v615_v1 = vld [vmem:[#allocation8 + $0x668] sm:$0xff]  ;;  %v3153_v2 = vcombine.low %v491_v54, %v495_v55  ;;  %v436_v55 = vld [vmem:[#allocation8 + $0xd0] sm:$0xff] }
 0x152   :  { %2084 = vmatprep.subr.bf16.mxu0 %v3074_v3  ;;  %2125 = vmatprep.subr.bf16.mxu1 %v3202_v4  ;;  %v3281_v3 = vcombine.low %v619_v56, %v623_v57  ;;  %v3146_v4 = vcombine.high %v483_v62, %v487_v63  ;;  %v3274_v6 = vcombine.high %v611_v0, %v615_v1  ;;  %v440_v56 = vld [vmem:[#allocation8 + $0xf0] sm:$0xff] }
 0x153   :  { %v564_v57 = vld [vmem:[#allocation8 + $0x4d0] sm:$0xff] }
 0x155   :  { %2085 = vmatpush1.bf16.msra.mxu0 %v3073_v10  ;;  %2126 = vmatpush1.bf16.msra.mxu1 %v3201_v14  ;;  %v607_v10 = vld [vmem:[#allocation8 + $0x628] sm:$0xff]  ;;  %v3145_v14 = vcombine.low %v483_v62, %v487_v63  ;;  %v428_v63 = vld [vmem:[#allocation8 + $0x90] sm:$0xff] }
 0x156   :  { %2086 = vmatprep.subr.bf16.mxu0 %v3194_v15  ;;  %2127 = vmatprep.subr.bf16.mxu1 %v3322_v16  ;;  %v3273_v15 = vcombine.low %v611_v0, %v615_v1  ;;  %v3138_v16 = vcombine.high %v475_v7, %v479_v8  ;;  %v3266_v17 = vcombine.high %v603_v9, %v607_v10  ;;  %v432_v0 = vld [vmem:[#allocation8 + $0xb0] sm:$0xff] }
 0x157   :  { %v556_v1 = vld [vmem:[#allocation8 + $0x490] sm:$0xff] }
 0x159   :  { %2087 = vmatpush2.bf16.msra.mxu0 %v3193_v21  ;;  %2128 = vmatpush2.bf16.msra.mxu1 %v3321_v22  ;;  %v600_v21 = vld [vmem:[#allocation8 + $0x5f0] sm:$0xff]  ;;  %v3137_v22 = vcombine.low %v475_v7, %v479_v8 }
 0x15a   :  { %2088 = vmatprep.subr.bf16.mxu0 %v3186_v23  ;;  %2129 = vmatprep.subr.bf16.mxu1 %v3314_v24  ;;  %v3265_v23 = vcombine.low %v603_v9, %v607_v10  ;;  %v3132_v24 = vcombine.high %v468_v18, %v472_v19  ;;  %v3260_v25 = vcombine.high %v596_v20, %v600_v21  ;;  %v420_v8 = vld [vmem:[#allocation8 + $0x50] sm:$0xff] }
 0x15b   :  { %v424_v9 = vld [vmem:[#allocation8 + $0x70] sm:$0xff] }
 0x15c   :  { %v548_v10 = vld [vmem:[#allocation8 + $0x450] sm:$0xff] }
 0x15d   :  { %2089 = vmatpush2.bf16.msra.mxu0 %v3185_v29  ;;  %2130 = vmatpush2.bf16.msra.mxu1 %v3313_v30  ;;  %v592_v29 = vld [vmem:[#allocation8 + $0x5b0] sm:$0xff]  ;;  %v3131_v30 = vcombine.low %v468_v18, %v472_v19 }
 0x15e   :  { %2090 = vmatprep.subr.bf16.mxu0 %v3178_v31  ;;  %2131 = vmatprep.subr.bf16.mxu1 %v3306_v32  ;;  %v3259_v31 = vcombine.low %v596_v20, %v600_v21  ;;  %v3124_v32 = vcombine.high %v460_v26, %v464_v27  ;;  %v3252_v33 = vcombine.high %v588_v28, %v592_v29  ;;  %v412_v19 = vld [vmem:[#allocation8 + $0x10] sm:$0xff] }
 0x15f   :  { %v416_v20 = vld [vmem:[#allocation8 + $0x30] sm:$0xff] }
 0x160   :  { %v540_v21 = vld [vmem:[#allocation8 + $0x410] sm:$0xff] }
 0x161   :  { %2091 = vmatpush2.bf16.msra.mxu0 %v3177_v37  ;;  %2132 = vmatpush2.bf16.msra.mxu1 %v3305_v38  ;;  %v584_v37 = vld [vmem:[#allocation8 + $0x570] sm:$0xff]  ;;  %v3123_v38 = vcombine.low %v460_v26, %v464_v27 }
 0x162   :  { %2092 = vmatprep.subr.bf16.mxu0 %v3170_v39  ;;  %2133 = vmatprep.subr.bf16.mxu1 %v3298_v40  ;;  %v3251_v39 = vcombine.low %v588_v28, %v592_v29  ;;  %v3116_v40 = vcombine.high %v452_v34, %v456_v35  ;;  %v3244_v41 = vcombine.high %v580_v36, %v584_v37  ;;  %v532_v27 = vld [vmem:[#allocation8 + $0x3d0] sm:$0xff] }
 0x163   :  { %v536_v28 = vld [vmem:[#allocation8 + $0x3f0] sm:$0xff] }
 0x164   :  { %v660_v29 = vld [vmem:[#allocation8 + $0x7d0] sm:$0xff] }
 0x165   :  { %2093 = vmatpush2.bf16.msra.mxu0 %v3169_v50  ;;  %2134 = vmatpush2.bf16.msra.mxu1 %v3297_v51  ;;  %v576_v50 = vld [vmem:[#allocation8 + $0x530] sm:$0xff]  ;;  %v3115_v51 = vcombine.low %v452_v34, %v456_v35 }
 0x166   :  { %2094 = vmatprep.subr.bf16.mxu0 %v3162_v52  ;;  %2135 = vmatprep.subr.bf16.mxu1 %v3290_v53  ;;  %v3243_v52 = vcombine.low %v580_v36, %v584_v37  ;;  %v3108_v53 = vcombine.high %v444_v42, %v448_v43  ;;  %v3236_v54 = vcombine.high %v572_v47, %v576_v50  ;;  %v524_v35 = vld [vmem:[#allocation8 + $0x390] sm:$0xff] }
 0x167   :  { %v528_v36 = vld [vmem:[#allocation8 + $0x3b0] sm:$0xff] }
 0x168   :  { %v652_v37 = vld [vmem:[#allocation8 + $0x790] sm:$0xff] }
 0x169   :  { %2095 = vmatpush2.bf16.msra.mxu0 %v3161_v58  ;;  %2136 = vmatpush2.bf16.msra.mxu1 %v3289_v59  ;;  %v568_v58 = vld [vmem:[#allocation8 + $0x4f0] sm:$0xff]  ;;  %v3107_v59 = vcombine.low %v444_v42, %v448_v43 }
 0x16a   :  { %2096 = vmatprep.subr.bf16.mxu0 %v3154_v60  ;;  %2137 = vmatprep.subr.bf16.mxu1 %v3282_v61  ;;  %v3235_v60 = vcombine.low %v572_v47, %v576_v50  ;;  %v3100_v61 = vcombine.high %v436_v55, %v440_v56  ;;  %v3228_v62 = vcombine.high %v564_v57, %v568_v58  ;;  %v516_v43 = vld [vmem:[#allocation8 + $0x350] sm:$0xff] }
 0x16b   :  { %v520_v47 = vld [vmem:[#allocation8 + $0x370] sm:$0xff] }
 0x16c   :  { %v644_v50 = vld [vmem:[#allocation8 + $0x750] sm:$0xff] }
 0x16d   :  { %2097 = vmatpush2.bf16.msra.mxu0 %v3153_v2  ;;  %2138 = vmatpush2.bf16.msra.mxu1 %v3281_v3  ;;  %v560_v2 = vld [vmem:[#allocation8 + $0x4b0] sm:$0xff]  ;;  %v3099_v3 = vcombine.low %v436_v55, %v440_v56 }
 0x16e   :  { %2098 = vmatprep.subr.bf16.mxu0 %v3146_v4  ;;  %2139 = vmatprep.subr.bf16.mxu1 %v3274_v6  ;;  %v3227_v4 = vcombine.low %v564_v57, %v568_v58  ;;  %v3092_v6 = vcombine.high %v428_v63, %v432_v0  ;;  %v3220_v7 = vcombine.high %v556_v1, %v560_v2  ;;  %v508_v56 = vld [vmem:[#allocation8 + $0x310] sm:$0xff] }
 0x16f   :  { %v512_v57 = vld [vmem:[#allocation8 + $0x330] sm:$0xff] }
 0x170   :  { %v636_v58 = vld [vmem:[#allocation8 + $0x710] sm:$0xff] }
 0x171   :  { %2099 = vmatpush2.bf16.msra.mxu0 %v3145_v14  ;;  %2140 = vmatpush2.bf16.msra.mxu1 %v3273_v15  ;;  %v552_v14 = vld [vmem:[#allocation8 + $0x470] sm:$0xff]  ;;  %v3091_v15 = vcombine.low %v428_v63, %v432_v0 }
 0x172   :  { %2100 = vmatprep.subr.bf16.mxu0 %v3138_v16  ;;  %2141 = vmatprep.subr.bf16.mxu1 %v3266_v17  ;;  %v3219_v16 = vcombine.low %v556_v1, %v560_v2  ;;  %v3084_v17 = vcombine.high %v420_v8, %v424_v9  ;;  %v3212_v18 = vcombine.high %v548_v10, %v552_v14  ;;  %v500_v0 = vld [vmem:[#allocation8 + $0x2d0] sm:$0xff] }
 0x173   :  { %v504_v1 = vld [vmem:[#allocation8 + $0x2f0] sm:$0xff] }
 0x174   :  { %v628_v2 = vld [vmem:[#allocation8 + $0x6d0] sm:$0xff] }
 0x175   :  { %2101 = vmatpush2.bf16.msra.mxu0 %v3137_v22  ;;  %2142 = vmatpush2.bf16.msra.mxu1 %v3265_v23  ;;  %v544_v22 = vld [vmem:[#allocation8 + $0x430] sm:$0xff]  ;;  %v3083_v23 = vcombine.low %v420_v8, %v424_v9 }
 0x176   :  { %2152 = vmatprep.subr.bf16.mxu0 %v3132_v24  ;;  %2193 = vmatprep.subr.bf16.mxu1 %v3260_v25  ;;  %v3211_v24 = vcombine.low %v548_v10, %v552_v14  ;;  %v3076_v25 = vcombine.high %v412_v19, %v416_v20  ;;  %v3204_v26 = vcombine.high %v540_v21, %v544_v22  ;;  %v492_v9 = vld [vmem:[#allocation8 + $0x290] sm:$0xff] }
 0x177   :  { %v496_v10 = vld [vmem:[#allocation8 + $0x2b0] sm:$0xff] }
 0x178   :  { %2103 = vmatmul.mubr.bf16.vlgmr.msra.gmra.mxu0 %v3852_v13  ;;  %2144 = vmatmul.mubr.bf16.vlgmr.msra.gmra.mxu1 %v3846_v5  ;;  %v620_v14 = vld [vmem:[#allocation8 + $0x690] sm:$0xff] }
 0x179   :  { %2153 = vmatpush1.bf16.msra.mxu0 %v3131_v30  ;;  %2184 = vmatprep.mubr.bf16.mxu0 %v3848_v11  ;;  %v664_v30 = vld [vmem:[#allocation8 + $0x7f0] sm:$0xff] }
 0x17a   :  { %2194 = vmatpush1.bf16.msra.mxu1 %v3259_v31  ;;  %2225 = vmatprep.mubr.bf16.mxu1 %v3850_v12  ;;  %v3075_v31 = vcombine.low %v412_v19, %v416_v20  ;;  %v3324_v34 = vcombine.high %v660_v29, %v664_v30  ;;  %v484_v20 = vld [vmem:[#allocation8 + $0x250] sm:$0xff] }
 0x17b   :  { %2154 = vmatprep.subr.bf16.mxu0 %v3124_v32  ;;  %2195 = vmatprep.subr.bf16.mxu1 %v3252_v33  ;;  %v3203_v32 = vcombine.low %v540_v21, %v544_v22  ;;  %v3196_v33 = vcombine.high %v532_v27, %v536_v28  ;;  %v488_v21 = vld [vmem:[#allocation8 + $0x270] sm:$0xff] }
 0x17c   :  { %v612_v22 = vld [vmem:[#allocation8 + $0x650] sm:$0xff] }
 0x17d   :  { %2155 = vmatpush1.bf16.msra.mxu0 %v3123_v38  ;;  %v656_v38 = vld [vmem:[#allocation8 + $0x7b0] sm:$0xff] }
 0x17e   :  { %2196 = vmatpush1.bf16.msra.mxu1 %v3251_v39  ;;  %2156 = vmatprep.subr.bf16.mxu0 %v3116_v40  ;;  %v3195_v39 = vcombine.low %v532_v27, %v536_v28  ;;  %v3323_v40 = vcombine.low %v660_v29, %v664_v30  ;;  %v3316_v42 = vcombine.high %v652_v37, %v656_v38  ;;  %v476_v28 = vld [vmem:[#allocation8 + $0x210] sm:$0xff] }
 0x17f   :  { %2197 = vmatprep.subr.bf16.mxu1 %v3244_v41  ;;  %v3188_v41 = vcombine.high %v524_v35, %v528_v36  ;;  %v480_v29 = vld [vmem:[#allocation8 + $0x230] sm:$0xff] }
 0x180   :  { %v604_v30 = vld [vmem:[#allocation8 + $0x610] sm:$0xff] }
 0x181   :  { %2157 = vmatpush1.bf16.msra.mxu0 %v3115_v51  ;;  %v648_v51 = vld [vmem:[#allocation8 + $0x770] sm:$0xff] }
 0x182   :  { %2198 = vmatpush1.bf16.msra.mxu1 %v3243_v52  ;;  %2158 = vmatprep.subr.bf16.mxu0 %v3108_v53  ;;  %v3187_v52 = vcombine.low %v524_v35, %v528_v36  ;;  %v3315_v53 = vcombine.low %v652_v37, %v656_v38  ;;  %v3308_v55 = vcombine.high %v644_v50, %v648_v51  ;;  %v469_v36 = vld [vmem:[#allocation8 + $0x1d8] sm:$0xff] }
 0x183   :  { %2199 = vmatprep.subr.bf16.mxu1 %v3236_v54  ;;  %v3180_v54 = vcombine.high %v516_v43, %v520_v47  ;;  %v473_v37 = vld [vmem:[#allocation8 + $0x1f8] sm:$0xff] }
 0x184   :  { %v597_v38 = vld [vmem:[#allocation8 + $0x5d8] sm:$0xff] }
 0x185   :  { %2159 = vmatpush1.bf16.msra.mxu0 %v3107_v59  ;;  %v640_v59 = vld [vmem:[#allocation8 + $0x730] sm:$0xff] }
 0x186   :  { %2200 = vmatpush1.bf16.msra.mxu1 %v3235_v60  ;;  %2160 = vmatprep.subr.bf16.mxu0 %v3100_v61  ;;  %v3179_v60 = vcombine.low %v516_v43, %v520_v47  ;;  %v3307_v61 = vcombine.low %v644_v50, %v648_v51  ;;  %v3300_v63 = vcombine.high %v636_v58, %v640_v59  ;;  %v461_v47 = vld [vmem:[#allocation8 + $0x198] sm:$0xff] }
 0x187   :  { %2201 = vmatprep.subr.bf16.mxu1 %v3228_v62  ;;  %v3172_v62 = vcombine.high %v508_v56, %v512_v57  ;;  %v465_v50 = vld [vmem:[#allocation8 + $0x1b8] sm:$0xff]  ;;  %v3133_v51 = vcombine.low %v469_v36, %v473_v37 }
 0x189   :  { %2161 = vmatpush1.bf16.msra.mxu0 %v3099_v3  ;;  %v632_v3 = vld [vmem:[#allocation8 + $0x6f0] sm:$0xff] }
 0x18a   :  { %2202 = vmatpush1.bf16.msra.mxu1 %v3227_v4  ;;  %2162 = vmatprep.subr.bf16.mxu0 %v3092_v6  ;;  %v3171_v4 = vcombine.low %v508_v56, %v512_v57  ;;  %v3299_v6 = vcombine.low %v636_v58, %v640_v59  ;;  %v3292_v8 = vcombine.high %v628_v2, %v632_v3  ;;  %v453_v56 = vld [vmem:[#allocation8 + $0x158] sm:$0xff] }
 0x18b   :  { %2203 = vmatprep.subr.bf16.mxu1 %v3220_v7  ;;  %v3164_v7 = vcombine.high %v500_v0, %v504_v1  ;;  %v457_v57 = vld [vmem:[#allocation8 + $0x178] sm:$0xff] }
 0x18c   :  { %v581_v59 = vld [vmem:[#allocation8 + $0x558] sm:$0xff] }
 0x18d   :  { %2163 = vmatpush1.bf16.msra.mxu0 %v3091_v15  ;;  %v624_v15 = vld [vmem:[#allocation8 + $0x6b0] sm:$0xff] }
 0x18e   :  { %2204 = vmatpush1.bf16.msra.mxu1 %v3219_v16  ;;  %2164 = vmatprep.subr.bf16.mxu0 %v3084_v17  ;;  %v3163_v16 = vcombine.low %v500_v0, %v504_v1  ;;  %v3291_v17 = vcombine.low %v628_v2, %v632_v3  ;;  %v3284_v19 = vcombine.high %v620_v14, %v624_v15  ;;  %v445_v1 = vld [vmem:[#allocation8 + $0x118] sm:$0xff] }
 0x18f   :  { %2205 = vmatprep.subr.bf16.mxu1 %v3212_v18  ;;  %v3156_v18 = vcombine.high %v492_v9, %v496_v10  ;;  %v449_v2 = vld [vmem:[#allocation8 + $0x138] sm:$0xff] }
 0x190   :  { %v573_v3 = vld [vmem:[#allocation8 + $0x518] sm:$0xff] }
 0x191   :  { %2165 = vmatpush1.bf16.msra.mxu0 %v3083_v23  ;;  %v616_v23 = vld [vmem:[#allocation8 + $0x670] sm:$0xff] }
 0x192   :  { %2206 = vmatpush1.bf16.msra.mxu1 %v3211_v24  ;;  %2166 = vmatprep.subr.bf16.mxu0 %v3076_v25  ;;  %v3155_v24 = vcombine.low %v492_v9, %v496_v10  ;;  %v3283_v25 = vcombine.low %v620_v14, %v624_v15  ;;  %v3276_v27 = vcombine.high %v612_v22, %v616_v23  ;;  %v437_v9 = vld [vmem:[#allocation8 + $0xd8] sm:$0xff] }
 0x193   :  { %2207 = vmatprep.subr.bf16.mxu1 %v3204_v26  ;;  %v3148_v26 = vcombine.high %v484_v20, %v488_v21  ;;  %v441_v10 = vld [vmem:[#allocation8 + $0xf8] sm:$0xff] }
 0x194   :  { %v565_v14 = vld [vmem:[#allocation8 + $0x4d8] sm:$0xff] }
 0x195   :  { %2167 = vmatpush1.bf16.msra.mxu0 %v3075_v31  ;;  %v608_v31 = vld [vmem:[#allocation8 + $0x630] sm:$0xff]  ;;  %v569_v15 = vld [vmem:[#allocation8 + $0x4f8] sm:$0xff] }
 0x196   :  { %2208 = vmatpush1.bf16.msra.mxu1 %v3203_v32  ;;  %2168 = vmatprep.subr.bf16.mxu0 %v3196_v33  ;;  %v3147_v32 = vcombine.low %v484_v20, %v488_v21  ;;  %v3275_v33 = vcombine.low %v612_v22, %v616_v23  ;;  %v3268_v35 = vcombine.high %v604_v30, %v608_v31  ;;  %v433_v20 = vld [vmem:[#allocation8 + $0xb8] sm:$0xff] }
 0x197   :  { %2209 = vmatprep.subr.bf16.mxu1 %v3324_v34  ;;  %v3140_v34 = vcombine.high %v476_v28, %v480_v29  ;;  %v557_v21 = vld [vmem:[#allocation8 + $0x498] sm:$0xff]  ;;  %v3101_v23 = vcombine.low %v437_v9, %v441_v10 }
 0x198   :  { %v561_v22 = vld [vmem:[#allocation8 + $0x4b8] sm:$0xff] }
 0x199   :  { %2169 = vmatpush2.bf16.msra.mxu0 %v3195_v39  ;;  %v601_v39 = vld [vmem:[#allocation8 + $0x5f8] sm:$0xff] }
 0x19a   :  { %2210 = vmatpush2.bf16.msra.mxu1 %v3323_v40  ;;  %2170 = vmatprep.subr.bf16.mxu0 %v3188_v41  ;;  %v3139_v40 = vcombine.low %v476_v28, %v480_v29  ;;  %v3267_v41 = vcombine.low %v604_v30, %v608_v31  ;;  %v3262_v43 = vcombine.high %v597_v38, %v601_v39  ;;  %v425_v28 = vld [vmem:[#allocation8 + $0x78] sm:$0xff] }
 0x19b   :  { %2211 = vmatprep.subr.bf16.mxu1 %v3316_v42  ;;  %v3134_v42 = vcombine.high %v469_v36, %v473_v37  ;;  %v549_v29 = vld [vmem:[#allocation8 + $0x458] sm:$0xff] }
 0x19c   :  { %v553_v30 = vld [vmem:[#allocation8 + $0x478] sm:$0xff] }
 0x19d   :  { %2171 = vmatpush2.bf16.msra.mxu0 %v3187_v52  ;;  %v589_v52 = vld [vmem:[#allocation8 + $0x598] sm:$0xff] }
 0x19e   :  { %2212 = vmatpush2.bf16.msra.mxu1 %v3315_v53  ;;  %2172 = vmatprep.subr.bf16.mxu0 %v3180_v54  ;;  %v593_v53 = vld [vmem:[#allocation8 + $0x5b8] sm:$0xff]  ;;  %v3261_v54 = vcombine.low %v597_v38, %v601_v39 }
 0x19f   :  { %2213 = vmatprep.subr.bf16.mxu1 %v3308_v55  ;;  %v3126_v55 = vcombine.high %v461_v47, %v465_v50  ;;  %v3254_v58 = vcombine.high %v589_v52, %v593_v53  ;;  %v417_v36 = vld [vmem:[#allocation8 + $0x38] sm:$0xff] }
 0x1a0   :  { %v541_v37 = vld [vmem:[#allocation8 + $0x418] sm:$0xff] }
 0x1a1   :  { %2173 = vmatpush2.bf16.msra.mxu0 %v3179_v60  ;;  %v585_v60 = vld [vmem:[#allocation8 + $0x578] sm:$0xff] }
 0x1a2   :  { %2214 = vmatpush2.bf16.msra.mxu1 %v3307_v61  ;;  %2174 = vmatprep.subr.bf16.mxu0 %v3172_v62  ;;  %v3125_v61 = vcombine.low %v461_v47, %v465_v50  ;;  %v3253_v62 = vcombine.low %v589_v52, %v593_v53  ;;  %v3246_v0 = vcombine.high %v581_v59, %v585_v60  ;;  %v545_v38 = vld [vmem:[#allocation8 + $0x438] sm:$0xff] }
 0x1a3   :  { %2215 = vmatprep.subr.bf16.mxu1 %v3300_v63  ;;  %v3118_v63 = vcombine.high %v453_v56, %v457_v57  ;;  %v537_v47 = vld [vmem:[#allocation8 + $0x3f8] sm:$0xff]  ;;  %v3205_v53 = vcombine.low %v541_v37, %v545_v38 }
 0x1a4   :  { %v661_v50 = vld [vmem:[#allocation8 + $0x7d8] sm:$0xff] }
 0x1a5   :  { %2175 = vmatpush2.bf16.msra.mxu0 %v3171_v4  ;;  %v577_v4 = vld [vmem:[#allocation8 + $0x538] sm:$0xff] }
 0x1a6   :  { %2216 = vmatpush2.bf16.msra.mxu1 %v3299_v6  ;;  %2176 = vmatprep.subr.bf16.mxu0 %v3164_v7  ;;  %v3117_v6 = vcombine.low %v453_v56, %v457_v57  ;;  %v3245_v7 = vcombine.low %v581_v59, %v585_v60  ;;  %v525_v56 = vld [vmem:[#allocation8 + $0x398] sm:$0xff] }
 0x1a7   :  { %2217 = vmatprep.subr.bf16.mxu1 %v3292_v8  ;;  %v3110_v8 = vcombine.high %v445_v1, %v449_v2  ;;  %v529_v57 = vld [vmem:[#allocation8 + $0x3b8] sm:$0xff] }
 0x1a8   :  { %v657_v59 = vld [vmem:[#allocation8 + $0x7b8] sm:$0xff] }
 0x1a9   :  { %2177 = vmatpush2.bf16.msra.mxu0 %v3163_v16  ;;  %v3237_v16 = vcombine.low %v573_v3, %v577_v4 }
 0x1aa   :  { %2218 = vmatpush2.bf16.msra.mxu1 %v3291_v17  ;;  %2178 = vmatprep.subr.bf16.mxu0 %v3156_v18  ;;  %v3102_v17 = vcombine.high %v437_v9, %v441_v10  ;;  %v3230_v18 = vcombine.high %v565_v14, %v569_v15  ;;  %v513_v9 = vld [vmem:[#allocation8 + $0x338] sm:$0xff] }
 0x1ab   :  { %2219 = vmatprep.subr.bf16.mxu1 %v3284_v19  ;;  %v429_v19 = vld [vmem:[#allocation8 + $0x98] sm:$0xff] }
 0x1ac   :  { %v3093_v31 = vcombine.low %v429_v19, %v433_v20  ;;  %v637_v10 = vld [vmem:[#allocation8 + $0x718] sm:$0xff] }
 0x1ad   :  { %2179 = vmatpush2.bf16.msra.mxu0 %v3155_v24  ;;  %v3229_v24 = vcombine.low %v565_v14, %v569_v15  ;;  %v641_v14 = vld [vmem:[#allocation8 + $0x738] sm:$0xff] }
 0x1ae   :  { %2220 = vmatpush2.bf16.msra.mxu1 %v3283_v25  ;;  %2180 = vmatprep.subr.bf16.mxu0 %v3148_v26  ;;  %v3094_v25 = vcombine.high %v429_v19, %v433_v20  ;;  %v3222_v26 = vcombine.high %v557_v21, %v561_v22  ;;  %v505_v19 = vld [vmem:[#allocation8 + $0x2f8] sm:$0xff] }
 0x1af   :  { %2221 = vmatprep.subr.bf16.mxu1 %v3276_v27  ;;  %v421_v27 = vld [vmem:[#allocation8 + $0x58] sm:$0xff] }
 0x1b0   :  { %v3085_v39 = vcombine.low %v421_v27, %v425_v28  ;;  %v629_v20 = vld [vmem:[#allocation8 + $0x6d8] sm:$0xff] }
 0x1b1   :  { %2181 = vmatpush2.bf16.msra.mxu0 %v3147_v32  ;;  %v3221_v32 = vcombine.low %v557_v21, %v561_v22  ;;  %v633_v21 = vld [vmem:[#allocation8 + $0x6f8] sm:$0xff] }
 0x1b2   :  { %2222 = vmatpush2.bf16.msra.mxu1 %v3275_v33  ;;  %2182 = vmatprep.subr.bf16.mxu0 %v3140_v34  ;;  %v3086_v33 = vcombine.high %v421_v27, %v425_v28  ;;  %v3214_v34 = vcombine.high %v549_v29, %v553_v30  ;;  %v497_v27 = vld [vmem:[#allocation8 + $0x2b8] sm:$0xff] }
 0x1b3   :  { %2223 = vmatprep.subr.bf16.mxu1 %v3268_v35  ;;  %v413_v35 = vld [vmem:[#allocation8 + $0x18] sm:$0xff] }
 0x1b4   :  { %v3077_v52 = vcombine.low %v413_v35, %v417_v36  ;;  %v621_v28 = vld [vmem:[#allocation8 + $0x698] sm:$0xff] }
 0x1b5   :  { %2183 = vmatpush2.bf16.msra.mxu0 %v3139_v40  ;;  %v3213_v40 = vcombine.low %v549_v29, %v553_v30  ;;  %v625_v29 = vld [vmem:[#allocation8 + $0x6b8] sm:$0xff] }
 0x1b6   :  { %2224 = vmatpush2.bf16.msra.mxu1 %v3267_v41  ;;  %2234 = vmatprep.subr.bf16.mxu0 %v3134_v42  ;;  %v3078_v41 = vcombine.high %v413_v35, %v417_v36  ;;  %v3206_v42 = vcombine.high %v541_v37, %v545_v38  ;;  %v489_v35 = vld [vmem:[#allocation8 + $0x278] sm:$0xff] }
 0x1b7   :  { %2275 = vmatprep.subr.bf16.mxu1 %v3262_v43  ;;  %v533_v43 = vld [vmem:[#allocation8 + $0x3d8] sm:$0xff] }
 0x1b8   :  { %2185 = vmatmul.mubr.bf16.vlgmr.msra.gmra.mxu0 %v3852_v13  ;;  %v3197_v60 = vcombine.low %v533_v43, %v537_v47  ;;  %v613_v36 = vld [vmem:[#allocation8 + $0x658] sm:$0xff] }
 0x1b9   :  { %2226 = vmatmul.mubr.bf16.vlgmr.msra.gmra.mxu1 %v3846_v5  ;;  %2235 = vmatpush1.bf16.msra.mxu0 %v3133_v51  ;;  %v665_v51 = vld [vmem:[#allocation8 + $0x7f8] sm:$0xff] }
 0x1ba   :  { %2266 = vmatprep.mubr.bf16.mxu0 %v3848_v11  ;;  %2276 = vmatpush1.bf16.msra.mxu1 %v3261_v54  ;;  %v3238_v11 = vcombine.high %v573_v3, %v577_v4  ;;  %v3198_v54 = vcombine.high %v533_v43, %v537_v47  ;;  %v649_v3 = vld [vmem:[#allocation8 + $0x778] sm:$0xff]  ;;  %v3189_v4 = vcombine.low %v525_v56, %v529_v57 }
 0x1bb   :  { %2307 = vmatprep.mubr.bf16.mxu1 %v3850_v12  ;;  %2236 = vmatprep.subr.bf16.mxu0 %v3126_v55  ;;  %v3109_v12 = vcombine.low %v445_v1, %v449_v2  ;;  %v3326_v55 = vcombine.high %v661_v50, %v665_v51  ;;  %v521_v1 = vld [vmem:[#allocation8 + $0x378] sm:$0xff] }
 0x1bc   :  { %2277 = vmatprep.subr.bf16.mxu1 %v3254_v58  ;;  %v653_v58 = vld [vmem:[#allocation8 + $0x798] sm:$0xff] }
 0x1bd   :  { %2237 = vmatpush1.bf16.msra.mxu0 %v3125_v61  ;;  %v3325_v61 = vcombine.low %v661_v50, %v665_v51  ;;  %v645_v2 = vld [vmem:[#allocation8 + $0x758] sm:$0xff] }
 0x1be   :  { %2278 = vmatpush1.bf16.msra.mxu1 %v3253_v62  ;;  %2238 = vmatprep.subr.bf16.mxu0 %v3118_v63  ;;  %v3190_v62 = vcombine.high %v525_v56, %v529_v57  ;;  %v3318_v63 = vcombine.high %v653_v58, %v657_v59  ;;  %v617_v37 = vld [vmem:[#allocation8 + $0x678] sm:$0xff]  ;;  %v3542_v57 = vld [vmem:[#allocation11 + $0x78] sm:$0xff]  }
 0x1bf   :  { %2279 = vmatprep.subr.bf16.mxu1 %v3246_v0  ;;  %v517_v0 = vld [vmem:[#allocation8 + $0x358] sm:$0xff] }
 0x1c0   :  { %v3181_v15 = vcombine.low %v517_v0, %v521_v1  ;;  %v481_v43 = vld [vmem:[#allocation8 + $0x238] sm:$0xff] }
 0x1c1   :  { %2239 = vmatpush1.bf16.msra.mxu0 %v3117_v6  ;;  %v3317_v6 = vcombine.low %v653_v58, %v657_v59  ;;  %v605_v47 = vld [vmem:[#allocation8 + $0x618] sm:$0xff]  ;;  %v3558_v58 = vld [vmem:[#allocation11 + $0xf8] sm:$0xff]  }
 0x1c2   :  { %2280 = vmatpush1.bf16.msra.mxu1 %v3245_v7  ;;  %2240 = vmatprep.subr.bf16.mxu0 %v3110_v8  ;;  %v3182_v7 = vcombine.high %v517_v0, %v521_v1  ;;  %v3310_v8 = vcombine.high %v645_v2, %v649_v3  ;;  %v609_v50 = vld [vmem:[#allocation8 + $0x638] sm:$0xff]  ;;  %v3543_v59 = vld [vmem:[#allocation11 + $0x38] sm:$0xff]  }
 0x1c3   :  { %2281 = vmatprep.subr.bf16.mxu1 %v3238_v11  ;;  %v509_v11 = vld [vmem:[#allocation8 + $0x318] sm:$0xff]  ;;  %v3269_v56 = vcombine.low %v605_v47, %v609_v50 }
 0x1c4   :  { %v3173_v22 = vcombine.low %v509_v11, %v513_v9  ;;  %v3560_v0 = vld [vmem:[#allocation11 + $0xf0] sm:$0xff]  }
 0x1c5   :  { %2241 = vmatpush1.bf16.msra.mxu0 %v3109_v12  ;;  %v3309_v12 = vcombine.low %v645_v2, %v649_v3  ;;  %v3545_v3 = vld [vmem:[#allocation11 + $0x30] sm:$0xff]  }
 0x1c6   :  { %2282 = vmatpush1.bf16.msra.mxu1 %v3237_v16  ;;  %2242 = vmatprep.subr.bf16.mxu0 %v3102_v17  ;;  %v3174_v16 = vcombine.high %v509_v11, %v513_v9  ;;  %v3302_v17 = vcombine.high %v637_v10, %v641_v14  ;;  %v3562_v9 = vld [vmem:[#allocation11 + $0xe8] sm:$0xff]  }
 0x1c7   :  { %2283 = vmatprep.subr.bf16.mxu1 %v3230_v18  ;;  %v501_v18 = vld [vmem:[#allocation8 + $0x2d8] sm:$0xff] }
 0x1c8   :  { %v3165_v30 = vcombine.low %v501_v18, %v505_v19 }
 0x1c9   :  { %2243 = vmatpush1.bf16.msra.mxu0 %v3101_v23  ;;  %v3301_v23 = vcombine.low %v637_v10, %v641_v14 }
 0x1ca   :  { %2284 = vmatpush1.bf16.msra.mxu1 %v3229_v24  ;;  %2244 = vmatprep.subr.bf16.mxu0 %v3094_v25  ;;  %v3166_v24 = vcombine.high %v501_v18, %v505_v19  ;;  %v3294_v25 = vcombine.high %v629_v20, %v633_v21  ;;  %v3564_v18 = vld [vmem:[#allocation11 + $0xe0] sm:$0xff]  }
 0x1cb   :  { %2285 = vmatprep.subr.bf16.mxu1 %v3222_v26  ;;  %v493_v26 = vld [vmem:[#allocation8 + $0x298] sm:$0xff] }
 0x1cc   :  { %v3157_v38 = vcombine.low %v493_v26, %v497_v27 }
 0x1cd   :  { %2245 = vmatpush1.bf16.msra.mxu0 %v3093_v31  ;;  %v3293_v31 = vcombine.low %v629_v20, %v633_v21  ;;  %v3549_v20 = vld [vmem:[#allocation11 + $0x20] sm:$0xff]   ;;  %v3550_v21 = vld [vmem:[#allocation11 + $0x58] sm:$0xff]  }
 0x1ce   :  { %2286 = vmatpush1.bf16.msra.mxu1 %v3221_v32  ;;  %2246 = vmatprep.subr.bf16.mxu0 %v3086_v33  ;;  %v3158_v32 = vcombine.high %v493_v26, %v497_v27  ;;  %v3286_v33 = vcombine.high %v621_v28, %v625_v29  ;;  %v3552_v26 = vld [vmem:[#allocation11 + $0x50] sm:$0xff]   ;;  %v3567_v27 = vld [vmem:[#allocation11 + $0x98] sm:$0xff]  }
 0x1cf   :  { %2287 = vmatprep.subr.bf16.mxu1 %v3214_v34  ;;  %v485_v34 = vld [vmem:[#allocation8 + $0x258] sm:$0xff] }
 0x1d0   :  { %v3149_v51 = vcombine.low %v485_v34, %v489_v35 }
 0x1d1   :  { %2247 = vmatpush1.bf16.msra.mxu0 %v3085_v39  ;;  %v3285_v39 = vcombine.low %v621_v28, %v625_v29  ;;  %v3568_v28 = vld [vmem:[#allocation11 + $0xd0] sm:$0xff]  }
 0x1d2   :  { %2288 = vmatpush1.bf16.msra.mxu1 %v3213_v40  ;;  %2248 = vmatprep.subr.bf16.mxu0 %v3078_v41  ;;  %v3150_v40 = vcombine.high %v485_v34, %v489_v35  ;;  %v3278_v41 = vcombine.high %v613_v36, %v617_v37  ;;  %v3553_v29 = vld [vmem:[#allocation11 + $0x10] sm:$0xff]   ;;  %v3555_v34 = vld [vmem:[#allocation11 + $0x8] sm:$0xff]  }
 0x1d3   :  { %2289 = vmatprep.subr.bf16.mxu1 %v3206_v42  ;;  %v477_v42 = vld [vmem:[#allocation8 + $0x218] sm:$0xff] }
 0x1d5   :  { %2249 = vmatpush1.bf16.msra.mxu0 %v3077_v52  ;;  %v3277_v52 = vcombine.low %v613_v36, %v617_v37  ;;  %v3571_v36 = vld [vmem:[#allocation11 + $0x88] sm:$0xff]   ;;  %v3572_v37 = vld [vmem:[#allocation11 + $0xc0] sm:$0xff]  }
 0x1d6   :  { %2290 = vmatpush1.bf16.msra.mxu1 %v3205_v53  ;;  %2250 = vmatprep.subr.bf16.mxu0 %v3198_v54  ;;  %v3142_v53 = vcombine.high %v477_v42, %v481_v43  ;;  %v3270_v54 = vcombine.high %v605_v47, %v609_v50  ;;  %v3576_v50 = vld [vmem:[#allocation11 + $0x170] sm:$0xff]  }
 0x1d7   :  { %2291 = vmatprep.subr.bf16.mxu1 %v3326_v55  ;;  %v3141_v55 = vcombine.low %v477_v42, %v481_v43  ;;  %v3590_v42 = vld [vmem:[#allocation11 + $0x1f8] sm:$0xff]  }
 0x1d8   :  { %v3575_v43 = vld [vmem:[#allocation11 + $0x138] sm:$0xff]  }
 0x1d9   :  { %2251 = vmatpush2.bf16.msra.mxu0 %v3197_v60  ;;  %v3868_v60 = vld [vmem:[#allocation10] sm:$0xff] }
 0x1da   :  { %2292 = vmatpush2.bf16.msra.mxu1 %v3325_v61  ;;  %2252 = vmatprep.subr.bf16.mxu0 %v3190_v62  ;;  %v3544_v61 = vld [vmem:[#allocation11 + $0x70] sm:$0xff]   ;;  %v3559_v62 = vld [vmem:[#allocation11 + $0xb8] sm:$0xff]  }
 0x1db   :  { %2293 = vmatprep.subr.bf16.mxu1 %v3318_v63  ;;  %v675_v63 = vrot.slane %v3868_v60, %v146_v48 }
 0x1dd   :  { %2253 = vmatpush2.bf16.msra.mxu0 %v3189_v4 }
 0x1de   :  { %2294 = vmatpush2.bf16.msra.mxu1 %v3317_v6  ;;  %2254 = vmatprep.subr.bf16.mxu0 %v3182_v7  ;;  %v3546_v7 = vld [vmem:[#allocation11 + $0x68] sm:$0xff]  }
 0x1df   :  { %2295 = vmatprep.subr.bf16.mxu1 %v3310_v8  ;;  %v3561_v8 = vld [vmem:[#allocation11 + $0xb0] sm:$0xff]  }
 0x1e1   :  { %2255 = vmatpush2.bf16.msra.mxu0 %v3181_v15 }
 0x1e2   :  { %2296 = vmatpush2.bf16.msra.mxu1 %v3309_v12  ;;  %2256 = vmatprep.subr.bf16.mxu0 %v3174_v16  ;;  %v3563_v16 = vld [vmem:[#allocation11 + $0xa8] sm:$0xff]  }
 0x1e3   :  { %2297 = vmatprep.subr.bf16.mxu1 %v3302_v17 }
 0x1e5   :  { %2257 = vmatpush2.bf16.msra.mxu0 %v3173_v22  ;;  %v3565_v22 = vld [vmem:[#allocation11 + $0xa0] sm:$0xff]  }
 0x1e6   :  { %2298 = vmatpush2.bf16.msra.mxu1 %v3301_v23  ;;  %2258 = vmatprep.subr.bf16.mxu0 %v3166_v24  ;;  %v3566_v23 = vld [vmem:[#allocation11 + $0xd8] sm:$0xff]  }
 0x1e7   :  { %2299 = vmatprep.subr.bf16.mxu1 %v3294_v25  ;;  %v3551_v24 = vld [vmem:[#allocation11 + $0x18] sm:$0xff]   ;;  %v671_v25 = vrot.slane %v3868_v60, %v142_v45  ;;  %v3556_v45 = vld [vmem:[#allocation11 + $0x40] sm:$0xff]  }
 0x1e9   :  { %2259 = vmatpush2.bf16.msra.mxu0 %v3165_v30 }
 0x1ea   :  { %2300 = vmatpush2.bf16.msra.mxu1 %v3293_v31  ;;  %2260 = vmatprep.subr.bf16.mxu0 %v3158_v32  ;;  %v3554_v31 = vld [vmem:[#allocation11 + $0x48] sm:$0xff]   ;;  %v3569_v32 = vld [vmem:[#allocation11 + $0x90] sm:$0xff]  }
 0x1eb   :  { %2301 = vmatprep.subr.bf16.mxu1 %v3286_v33  ;;  %v3570_v33 = vld [vmem:[#allocation11 + $0xc8] sm:$0xff]  }
 0x1ed   :  { %2261 = vmatpush2.bf16.msra.mxu0 %v3157_v38  ;;  %v3557_v38 = vld [vmem:[#allocation11] sm:$0xff]  }
 0x1ee   :  { %2302 = vmatpush2.bf16.msra.mxu1 %v3285_v39  ;;  %2262 = vmatprep.subr.bf16.mxu0 %v3150_v40  ;;  %v3573_v40 = vld [vmem:[#allocation11 + $0x80] sm:$0xff]  }
 0x1ef   :  { %2303 = vmatprep.subr.bf16.mxu1 %v3278_v41  ;;  %v3574_v41 = vld [vmem:[#allocation11 + $0x178] sm:$0xff]  }
 0x1f1   :  { %2263 = vmatpush2.bf16.msra.mxu0 %v3149_v51  ;;  %v3577_v51 = vld [vmem:[#allocation11 + $0x130] sm:$0xff]  }
 0x1f2   :  { %2304 = vmatpush2.bf16.msra.mxu1 %v3277_v52  ;;  %2264 = vmatprep.subr.bf16.mxu0 %v3142_v53  ;;  %v3578_v52 = vld [vmem:[#allocation11 + $0x168] sm:$0xff]  }
 0x1f3   :  { %2305 = vmatprep.subr.bf16.mxu1 %v3270_v54  ;;  %v3579_v53 = vld [vmem:[#allocation11 + $0x128] sm:$0xff]   ;;  %v3580_v54 = vld [vmem:[#allocation11 + $0x160] sm:$0xff]  }
 0x1f5   :  { %2265 = vmatpush2.bf16.msra.mxu0 %v3141_v55  ;;  %v3581_v55 = vld [vmem:[#allocation11 + $0x120] sm:$0xff]  }
 0x1f6   :  { %2306 = vmatpush2.bf16.msra.mxu1 %v3269_v56  ;;  %3392 = vmatprep.subr.bf16.mxu0 %v3542_v57  ;;  %v3582_v56 = vld [vmem:[#allocation11 + $0x158] sm:$0xff]  }
 0x1f7   :  { %3414 = vmatprep.subr.bf16.mxu1 %v3558_v58  ;;  %v3583_v57 = vld [vmem:[#allocation11 + $0x118] sm:$0xff]   ;;  %v3584_v58 = vld [vmem:[#allocation11 + $0x150] sm:$0xff]  }
 0x1f8   :  { %2267 = vmatmul.mubr.bf16.vlgmr.msra.gmra.mxu0 %v3852_v13  ;;  %v2022_v1 = vpop.f32.mrf.mxu0  ;;  %v2063_v2 = vpop.f32.mrf.mxu1  ;;  %v3547_v13 = vld [vmem:[#allocation11 + $0x28] sm:$0xff]  }
 0x1f9   :  { %2308 = vmatmul.mubr.bf16.vlgmr.msra.gmra.mxu1 %v3846_v5  ;;  %3393 = vmatpush3.bf16.msra.mxu0 %v3543_v59  ;;  %v3548_v5 = vld [vmem:[#allocation11 + $0x60] sm:$0xff]   ;;  %v2023_v30 = vadd.f32 %v2022_v1, %v671_v25  ;;  %v3585_v59 = vld [vmem:[#allocation11 + $0x110] sm:$0xff]   ;;  %v679_v1 = vrot.slane %v3868_v60, %v150_v46 }
 0x1fa   :  { %v2024_v4 = vpop.f32.mrf.mxu0  ;;  %v2065_v6 = vpop.f32.mrf.mxu1  ;;  %3394 = vmatprep.subr.bf16.mxu0 %v3544_v61  ;;  %3415 = vmatpush3.bf16.msra.mxu1 %v3559_v62  ;;  %v3586_v61 = vld [vmem:[#allocation11 + $0x148] sm:$0xff]   ;;  %v3600_v25 = vld [vmem:[#allocation11 + $0x1d0] sm:$0xff]  }
 0x1fb   :  { %v2025_v11 = vadd.f32 %v2024_v4, %v675_v63  ;;  %3416 = vmatprep.subr.bf16.mxu1 %v3560_v0  ;;  %v2064_v35 = vadd.f32 %v2063_v2, %v2023_v30  ;;  %v3587_v62 = vld [vmem:[#allocation11 + $0x108] sm:$0xff]   ;;  %v3588_v63 = vld [vmem:[#allocation11 + $0x140] sm:$0xff]   ;;  %v683_v2 = vrot.slane %v3868_v60, %v154_v49  ;;  %v3593_v49 = vld [vmem:[#allocation11 + $0x1b0] sm:$0xff]  }
 0x1fc   :  { %v2026_v48 = vpop.f32.mrf.mxu0  ;;  %v2067_v10 = vpop.f32.mrf.mxu1  ;;  %v3589_v0 = vld [vmem:[#allocation11 + $0x100] sm:$0xff]  }
 0x1fd   :  { %v2066_v14 = vadd.f32 %v2065_v6, %v2025_v11  ;;  %3395 = vmatpush3.bf16.msra.mxu0 %v3545_v3  ;;  %v2316_v39 = vmax.f32 %v2064_v35, 0.0  ;;  %v3605_v30 = vld [vmem:[#allocation11 + $0x180] sm:$0xff]  }
 0x1fe   :  { %v2027_v15 = vpop.f32.mrf.mxu0  ;;  %v2068_v12 = vpop.f32.mrf.mxu1  ;;  %3396 = vmatprep.subr.bf16.mxu0 %v3546_v7  ;;  %3417 = vmatpush3.bf16.msra.mxu1 %v3561_v8 }
 0x1ff   :  { %v2317_v17 = vmax.f32 %v2066_v14, 0.0  ;;  %3418 = vmatprep.subr.bf16.mxu1 %v3562_v9  ;;  %v2324_v47 = vpack.c.bf16 %v2316_v39, %v2316_v39 }
 0x201   :  { %v2325_v19 = vpack.c.bf16 %v2317_v17, %v2317_v17  ;;  %3397 = vmatpush3.bf16.msra.mxu0 %v3547_v13 }
 0x202   :  { %3398 = vmatprep.subr.bf16.mxu0 %v3548_v5  ;;  %3419 = vmatpush3.bf16.msra.mxu1 %v3563_v16  ;;  %v3591_v16 = vld [vmem:[#allocation11 + $0x1b8] sm:$0xff]  }
 0x203   :  { %2883 = vmatprep.mubr.bf16.mxu0 %v2325_v19  ;;  %3420 = vmatprep.subr.bf16.mxu1 %v3564_v18  ;;  %v3592_v18 = vld [vmem:[#allocation11 + $0x1f0] sm:$0xff]   ;;  %v3594_v19 = vld [vmem:[#allocation11 + $0x1e8] sm:$0xff]  }
 0x205   :  { %3399 = vmatpush3.bf16.msra.mxu0 %v3549_v20  ;;  %v3595_v20 = vld [vmem:[#allocation11 + $0x1a8] sm:$0xff]  }
 0x206   :  { %3400 = vmatprep.subr.bf16.mxu0 %v3550_v21  ;;  %3421 = vmatpush3.bf16.msra.mxu1 %v3565_v22  ;;  %v3596_v21 = vld [vmem:[#allocation11 + $0x1e0] sm:$0xff]  }
 0x207   :  { %3422 = vmatprep.subr.bf16.mxu1 %v3566_v23  ;;  %v3597_v22 = vld [vmem:[#allocation11 + $0x1a0] sm:$0xff]   ;;  %v3598_v23 = vld [vmem:[#allocation11 + $0x1d8] sm:$0xff]  }
 0x209   :  { %3401 = vmatpush3.bf16.msra.mxu0 %v3551_v24  ;;  %v3599_v24 = vld [vmem:[#allocation11 + $0x198] sm:$0xff]  }
 0x20a   :  { %3402 = vmatprep.subr.bf16.mxu0 %v3552_v26  ;;  %3423 = vmatpush3.bf16.msra.mxu1 %v3567_v27  ;;  %v3601_v26 = vld [vmem:[#allocation11 + $0x190] sm:$0xff]   ;;  %v3602_v27 = vld [vmem:[#allocation11 + $0x1c8] sm:$0xff]  }
 0x20b   :  { %3424 = vmatprep.subr.bf16.mxu1 %v3568_v28  ;;  %v3603_v28 = vld [vmem:[#allocation11 + $0x188] sm:$0xff]  }
 0x20d   :  { %3403 = vmatpush3.bf16.msra.mxu0 %v3553_v29  ;;  %v3604_v29 = vld [vmem:[#allocation11 + $0x1c0] sm:$0xff]  }
 0x20e   :  { %3404 = vmatprep.subr.bf16.mxu0 %v3554_v31  ;;  %3425 = vmatpush3.bf16.msra.mxu1 %v3569_v32  ;;  %v686_v31 = vsub.s32 4, %v3832_v44  ;;  %v690_v32 = vsub.s32 5, %v3832_v44 }
 0x20f   :  { %3426 = vmatprep.subr.bf16.mxu1 %v3570_v33 }
 0x210   :  { %v687_v33 = vrot.slane %v3868_v60, %v686_v31 }
 0x211   :  { %3405 = vmatpush3.bf16.msra.mxu0 %v3555_v34  ;;  %v691_v34 = vrot.slane %v3868_v60, %v690_v32 }
 0x212   :  { %3406 = vmatprep.subr.bf16.mxu0 %v3556_v45  ;;  %3427 = vmatpush3.bf16.msra.mxu1 %v3571_v36 }
 0x213   :  { %3428 = vmatprep.subr.bf16.mxu1 %v3572_v37 }
 0x215   :  { %3407 = vmatpush3.bf16.msra.mxu0 %v3557_v38 }
 0x216   :  { %3429 = vmatpush3.bf16.msra.mxu1 %v3573_v40  ;;  %3436 = vmatprep.subr.bf16.mxu0 %v3574_v41 }
 0x217   :  { %3458 = vmatprep.subr.bf16.mxu1 %v3590_v42 }
 0x218   :  { %2884 = vmatmul.mubr.bf16.vlgmr.msra.gmra.mxu0 %v2324_v47 }
 0x219   :  { %3437 = vmatpush3.bf16.msra.mxu0 %v3575_v43 }
 0x21a   :  { %3438 = vmatprep.subr.bf16.mxu0 %v3576_v50 }
 0x21d   :  { %3439 = vmatpush3.bf16.msra.mxu0 %v3577_v51 }
 0x21e   :  { %3440 = vmatprep.subr.bf16.mxu0 %v3578_v52 }
 0x221   :  { %3441 = vmatpush3.bf16.msra.mxu0 %v3579_v53 }
 0x222   :  { %3442 = vmatprep.subr.bf16.mxu0 %v3580_v54 }
 0x225   :  { %3443 = vmatpush3.bf16.msra.mxu0 %v3581_v55  ;;  %v694_v55 = vsub.s32 6, %v3832_v44 }
 0x226   :  { %3444 = vmatprep.subr.bf16.mxu0 %v3582_v56  ;;  %v698_v56 = vsub.s32 7, %v3832_v44 }
 0x229   :  { %3445 = vmatpush3.bf16.msra.mxu0 %v3583_v57  ;;  %v695_v57 = vrot.slane %v3868_v60, %v694_v55 }
 0x22a   :  { %3446 = vmatprep.subr.bf16.mxu0 %v3584_v58  ;;  %v699_v58 = vrot.slane %v3868_v60, %v698_v56 }
 0x22d   :  { %3447 = vmatpush3.bf16.msra.mxu0 %v3585_v59 }
 0x22e   :  { %3448 = vmatprep.subr.bf16.mxu0 %v3586_v61 }
 0x231   :  { %3449 = vmatpush3.bf16.msra.mxu0 %v3587_v62 }
 0x232   :  { %3450 = vmatprep.subr.bf16.mxu0 %v3588_v63 }
 0x235   :  { %3451 = vmatpush3.bf16.msra.mxu0 %v3589_v0 }
 0x238   :  { %v2104_v3 = vpop.f32.mrf.mxu0  ;;  %v2145_v4 = vpop.f32.mrf.mxu1 }
 0x239   :  { %v2105_v6 = vadd.f32 %v2104_v3, %v679_v1 }
 0x23a   :  { %v2106_v7 = vpop.f32.mrf.mxu0  ;;  %v2147_v8 = vpop.f32.mrf.mxu1 }
 0x23b   :  { %v2146_v11 = vadd.f32 %v2145_v4, %v2105_v6  ;;  %v2107_v9 = vadd.f32 %v2106_v7, %v683_v2 }
 0x23c   :  { %v2108_v48 = vpop.f32.mrf.mxu0  ;;  %v2149_v10 = vpop.f32.mrf.mxu1 }
 0x23d   :  { %v2148_v14 = vadd.f32 %v2147_v8, %v2107_v9  ;;  %v2318_v13 = vmax.f32 %v2146_v11, 0.0 }
 0x23e   :  { %v2109_v15 = vpop.f32.mrf.mxu0  ;;  %v2150_v12 = vpop.f32.mrf.mxu1 }
 0x23f   :  { %v2319_v5 = vmax.f32 %v2148_v14, 0.0  ;;  %v2326_v17 = vpack.c.bf16 %v2318_v13, %v2318_v13  ;;  %v3327_v12 = vld [vmem:[%s3904_s6] ss:$0 sm:$0xff]  ;;  %s3773_s6 = smov [#allocation13]  }
 0x240   :  { %s3027_s10 = sshll.u32 %s3773_s6, 4  ;;  %s3028_s10 = int_to_ptr.vmem [resolvable:$true] %s3027_s10 }
 0x241   :  { %v2327_v46 = vpack.c.bf16 %v2319_v5, %v2319_v5  ;;  %s3730_s11 = scalar_lea.vmem %s3028_s10, 128  ;;  %p3735_p3 = scmp.lt.s32.totalorder %s3028_s10, %s3028_s10 }
 0x242   :  { %p3731_p2 = scmp.ne.s32.totalorder %s3028_s10, %s3730_s11  ;;  %p3736_p4 = scmp.lt.s32.totalorder %s3730_s11, %s3730_s11 }
 0x243   :  { %2923 = vmatprep.mubr.bf16.mxu1 %v2327_v46 }
 0x244   :  { %2924 = vmatmul.mubr.bf16.vlgmr.msra.gmra.mxu1 %v2326_v17  ;;  %p3737_p5 = por %p3736_p4, %p3735_p3 }
 0x245   :  { %3459 = vmatpush3.bf16.msra.mxu1 %v3591_v16 }
 0x246   :  { %3460 = vmatprep.subr.bf16.mxu1 %v3592_v18  ;;  %p3738_p6 = pnand %p3737_p5, %p3731_p2 }
 0x249   :  { %3461 = vmatpush3.bf16.msra.mxu1 %v3593_v49 }
 0x24a   :  { %3462 = vmatprep.subr.bf16.mxu1 %v3594_v19 }
 0x24d   :  { %3463 = vmatpush3.bf16.msra.mxu1 %v3595_v20 }
 0x24e   :  { %3464 = vmatprep.subr.bf16.mxu1 %v3596_v21 }
 0x251   :  { %3465 = vmatpush3.bf16.msra.mxu1 %v3597_v22 }
 0x252   :  { %3466 = vmatprep.subr.bf16.mxu1 %v3598_v23 }
 0x255   :  { %3467 = vmatpush3.bf16.msra.mxu1 %v3599_v24 }
 0x256   :  { %3468 = vmatprep.subr.bf16.mxu1 %v3600_v25 }
 0x259   :  { %3469 = vmatpush3.bf16.msra.mxu1 %v3601_v26 }
 0x25a   :  { %3470 = vmatprep.subr.bf16.mxu1 %v3602_v27 }
 0x25d   :  { %3471 = vmatpush3.bf16.msra.mxu1 %v3603_v28 }
 0x25e   :  { %3472 = vmatprep.subr.bf16.mxu1 %v3604_v29 }
 0x261   :  { %3473 = vmatpush3.bf16.msra.mxu1 %v3605_v30 }
 0x278   :  { %v2186_v35 = vpop.f32.mrf.mxu0 }
 0x279   :  { %v2187_v45 = vadd.f32 %v2186_v35, %v687_v33  ;;  %v2227_v36 = vpop.f32.mrf.mxu1 }
 0x27a   :  { %v2188_v37 = vpop.f32.mrf.mxu0 }
 0x27b   :  { %v2228_v38 = vadd.f32 %v2227_v36, %v2187_v45  ;;  %v2189_v39 = vadd.f32 %v2188_v37, %v691_v34  ;;  %v2229_v40 = vpop.f32.mrf.mxu1 }
 0x27c   :  { %v2190_v41 = vpop.f32.mrf.mxu0 }
 0x27d   :  { %v2230_v42 = vadd.f32 %v2229_v40, %v2189_v39  ;;  %v2231_v43 = vpop.f32.mrf.mxu1  ;;  %v2320_v47 = vmax.f32 %v2228_v38, 0.0 }
 0x27e   :  { %v2191_v50 = vpop.f32.mrf.mxu0 }
 0x27f   :  { %v2321_v51 = vmax.f32 %v2230_v42, 0.0  ;;  %v2232_v52 = vpop.f32.mrf.mxu1  ;;  %v2328_v54 = vpack.c.bf16 %v2320_v47, %v2320_v47 }
 0x281   :  { %v2329_v53 = vpack.c.bf16 %v2321_v51, %v2321_v51 }
 0x283   :  { %2963 = vmatprep.mubr.bf16.mxu0 %v2329_v53 }
 0x284   :  { %2964 = vmatmul.mubr.bf16.vlgmr.msra.gmra.mxu0 %v2328_v54 }
 0x2b8   :  { %v2268_v59 = vpop.f32.mrf.mxu0 }
 0x2b9   :  { %v2269_v61 = vadd.f32 %v2268_v59, %v695_v57  ;;  %v2309_v62 = vpop.f32.mrf.mxu1 }
 0x2ba   :  { %v2270_v63 = vpop.f32.mrf.mxu0 }
 0x2bb   :  { %v2310_v0 = vadd.f32 %v2309_v62, %v2269_v61  ;;  %v2271_v1 = vadd.f32 %v2270_v63, %v699_v58  ;;  %v2311_v2 = vpop.f32.mrf.mxu1 }
 0x2bc   :  { %v2272_v3 = vpop.f32.mrf.mxu0 }
 0x2bd   :  { %v2312_v4 = vadd.f32 %v2311_v2, %v2271_v1  ;;  %v2313_v6 = vpop.f32.mrf.mxu1  ;;  %v2322_v7 = vmax.f32 %v2310_v0, 0.0 }
 0x2be   :  { %v2273_v8 = vpop.f32.mrf.mxu0 }
 0x2bf   :  { %v2323_v11 = vmax.f32 %v2312_v4, 0.0  ;;  %v2314_v9 = vpop.f32.mrf.mxu1  ;;  %v2330_v44 = vpack.c.bf16 %v2322_v7, %v2322_v7 }
 0x2c1   :  { %v2331_v48 = vpack.c.bf16 %v2323_v11, %v2323_v11 }
 0x2c3   :  { %3003 = vmatprep.mubr.bf16.mxu1 %v2331_v48 }
 0x2c4   :  { %3004 = vmatmul.mubr.bf16.vlgmr.msra.gmra.mxu1 %v2330_v44 }
 0x2d8   :  { %v3408_v10 = vpop.f32.mrf.mxu0 }
 0x2da   :  { %v3409_v60 = vpop.f32.mrf.mxu0 }
 0x2db   :  { %v3410_v14 = vadd.f32 %v3409_v60, %v3408_v10 }
 0x2dc   :  { %v3411_v13 = vpop.f32.mrf.mxu0 }
 0x2dd   :  { %v2886_v16 = vadd.f32 %v3410_v14, %v3327_v12 }
 0x2de   :  { %v3412_v15 = vpop.f32.mrf.mxu0 }
 0x304   :  { %v3430_v5 = vpop.f32.mrf.mxu1 }
 0x306   :  { %v3431_v46 = vpop.f32.mrf.mxu1 }
 0x307   :  { %v3432_v17 = vadd.f32 %v3431_v46, %v3430_v5 }
 0x308   :  { %v3433_v18 = vpop.f32.mrf.mxu1 }
 0x309   :  { %v2926_v49 = vadd.f32 %v3432_v17, %v2886_v16 }
 0x30a   :  { %v3434_v19 = vpop.f32.mrf.mxu1 }
 0x344   :  { %v3452_v20 = vpop.f32.mrf.mxu0 }
 0x346   :  { %v3453_v21 = vpop.f32.mrf.mxu0 }
 0x347   :  { %v3454_v22 = vadd.f32 %v3453_v21, %v3452_v20 }
 0x348   :  { %v3455_v23 = vpop.f32.mrf.mxu0 }
 0x349   :  { %v2966_v24 = vadd.f32 %v3454_v22, %v2926_v49 }
 0x34a   :  { %v3456_v25 = vpop.f32.mrf.mxu0 }
 0x384   :  { %v3474_v26 = vpop.f32.mrf.mxu1 }
 0x386   :  { %v3475_v27 = vpop.f32.mrf.mxu1 }
 0x387   :  { %v3476_v28 = vadd.f32 %v3475_v27, %v3474_v26 }
 0x388   :  { %v3477_v29 = vpop.f32.mrf.mxu1 }
 0x389   :  { %v3006_v30 = vadd.f32 %v3476_v28, %v2966_v24 }
 0x38a   :  { %v3478_v31 = vpop.f32.mrf.mxu1 }
 0x38b   :  { %3011 = vmax.xlane.f32.xlu0 %v3006_v30 }
 0x414   :  { %v3012_v32 = vpop.xlane.xlu0 %3011 }
 0x415   :  { %v3013_v33 = vsub.f32 %v3006_v30, %v3012_v32 }
 0x417   :  { %v3014_v34 = vmul.f32 1.442695, %v3013_v33 }
 0x419   :  { %3606 = vpow2.f32 %v3014_v34 }
 0x426   :  { %v3607_v35 = vpop.eup %3606 }
 0x427   :  { %3016 = vadd.xlane.f32.xlu0 %v3607_v35 }
 0x4b0   :  { %v3017_v45 = vpop.xlane.xlu0 %3016 }
 0x4b1   :  { %3608 = vrcp.f32 %v3017_v45 }
 0x4be   :  { %v3609_v36 = vpop.eup %3608 }
 0x4bf   :  { %v3019_v37 = vmul.f32 %v3609_v36, %v3607_v35 }
 0x4c1   :  { %3020 = vst [vmem:[#allocation13] sm:$0xff] %v3019_v37 }
 0x4c2   :  { %3741 = shalt.err (!%p3738_p6)
}
 0x4c3   :  { %3030 = dma.vmem_to_hbm [thread:$0]  %s3028_s10, 128, %s3905_s7, [#allocation4]  }
 0x4c4   :  { %3758 = dma.done.wait [#allocation4], 128  }
 0x4c5   :  { %3759 = vsyncadd [#allocation4], 4294967168 }
 0x4c6   :  { %3034 = vsyncpa [#allocation3], 1 }
 0x4c7   :  { %3035 = vsyncpa [#allocation6], 1 }
 0x4c8   :  { %3036 = vsyncpa [#allocation9], 1 }
 0x4c9   :  { %3037 = vsyncpa [#allocation12], 1 }
 0x4ca   :  { %3038 = vsyncpa [#allocation4], 1 }

</bundles_post_ra>
